<compile_context>
chip_gen: v7x
topology: tpu7x:2x2x1
jax: 0.10.0
libtpu: 0.0.40
codegen_flags: <defaults>
</compile_context>

<pallas_src>
import functools

import jax
import jax.numpy as jnp
import numpy as np
from jax.experimental import pallas as pl
from jax.experimental.pallas import tpu as pltpu


def _hardswish(x):
    return x * jnp.clip(x + 3.0, 0.0, 6.0) * (1.0 / 6.0)


# ----------------------------------------------------------------------------
# Fused Pallas kernel: full ShuffleV2ReduceBlock forward for one image.
# ----------------------------------------------------------------------------
def _block_kernel(x_ref, mask_ref, *rest, W):
    o_ref = rest[-1]
    unit_refs = rest[:-1]
    n_units = len(unit_refs) // 7

    x = x_ref[0]                      # (C_in, HW) — HW on the lane axis
    masks = mask_ref[...]             # (9, HW) {0,1} border-validity per tap
    HW = x.shape[-1]

    for u in range(n_units):
        w1_r, b1_r, wdw_r, bdw_r, w2_r, b2_r, pleft_r = unit_refs[7 * u:7 * u + 7]

        # -- conv_r1: 1x1 conv + folded BN + hardswish ---------------------
        # (input channel-shuffle + right-branch slice are folded into w1:
        #  its columns are permuted and zero-padded to the full channel count)
        y = jnp.dot(w1_r[...], x, preferred_element_type=jnp.float32) + b1_r[...]
        y = _hardswish(y)

        # -- dwconv_r.dconv: 3x3 depthwise (stride 1, pad 1) + folded BN ---
        # (no activation: no_depth_act=True).  Each spatial tap is a lane
        # rotation of the flattened HW axis; out-of-image taps are masked.
        wdw = wdw_r[...]              # (o_r, 9), BN scale already folded in
        acc = jnp.zeros_like(y)
        for kh in range(3):
            for kw in range(3):
                j = 3 * kh + kw
                s = (kh - 1) * W + (kw - 1)        # flat offset of this tap
                t = y if s == 0 else pltpu.roll(y, shift=(-s) % HW, axis=1)
                acc = acc + t * masks[j:j + 1, :] * wdw[:, j:j + 1]
        y = acc + bdw_r[...]

        # -- dwconv_r.pconv: 1x1 conv + folded BN + hardswish --------------
        # (concat + output channel-shuffle folded into w2/b2 rows; rows that
        #  belong to passthrough channels are all-zero -> hardswish(0) == 0)
        y = jnp.dot(w2_r[...], y, preferred_element_type=jnp.float32) + b2_r[...]
        y = _hardswish(y)

        # -- left-branch passthrough (identity rows of the output shuffle) --
        x = y + jnp.dot(pleft_r[...], x, preferred_element_type=jnp.float32)

    o_ref[0] = x.astype(o_ref.dtype)


@jax.jit
def shufflev2_reduce_block(x_nchw, fused_units, masks):
    """x_nchw: (N, C_in, H, W) float32 -> (N, C_out, H, W) float32."""
    N, C_in, H, W = x_nchw.shape
    HW = H * W
    x = x_nchw.reshape(N, C_in, HW)            # free reshape, stays NCHW order
    flat = [a for unit in fused_units for a in unit]
    C_out = fused_units[-1][6].shape[0]        # rows of last p_left

    kernel = functools.partial(_block_kernel, W=W)
    weight_specs = [pl.BlockSpec(a.shape, lambda n: (0, 0)) for a in flat]

    out = pl.pallas_call(
        kernel,
        out_shape=jax.ShapeDtypeStruct((N, C_out, HW), jnp.float32),
        grid=(N,),
        in_specs=[pl.BlockSpec((1, C_in, HW), lambda n: (n, 0, 0)),
                  pl.BlockSpec(masks.shape, lambda n: (0, 0))] + weight_specs,
        out_specs=pl.BlockSpec((1, C_out, HW), lambda n: (n, 0, 0)),
        compiler_params=pltpu.CompilerParams(
            dimension_semantics=("parallel",)),
    )(x, masks, *flat)
    return out.reshape(N, C_out, H, W)


# ----------------------------------------------------------------------------
# Wrapper-side folding: BN, channel shuffle / split / concat -> static weights
# ----------------------------------------------------------------------------
def _shuffle_perm(c, groups):
    cpg = c // groups
    return np.array([(o % groups) * cpg + (o // groups) for o in range(c)],
                    dtype=np.int64)


def _make_tap_masks(H, W):
    """(9, H*W) {0,1} masks: tap (kh,kw) valid iff the sampled pixel is in-image."""
    hi, wi = np.meshgrid(np.arange(H), np.arange(W), indexing="ij")
    hi = hi.reshape(-1)
    wi = wi.reshape(-1)
    m = np.zeros((9, H * W), np.float32)
    for kh in range(3):
        for kw in range(3):
            dh, dw = kh - 1, kw - 1
            ok = ((hi + dh >= 0) & (hi + dh < H) &
                  (wi + dw >= 0) & (wi + dw < W))
            m[3 * kh + kw] = ok.astype(np.float32)
    return jnp.asarray(m)


def _fuse_unit(p, c_in, c_out, l, groups, first_shuffle):
    """Fold BN + shuffle/slice/concat permutations into the branch weights."""
    o_r = c_out - l
    perm1 = _shuffle_perm(c_in, groups) if first_shuffle else np.arange(c_in)
    perm2 = _shuffle_perm(c_out, groups)
    left_src = perm1[:l]               # channels passed through untouched
    right_src = perm1[l:]              # channels feeding the right branch

    # pw1: BN scale folded into rows, input gather folded into (zero-padded) cols
    w1 = np.asarray(p["w1"]) * np.asarray(p["s1"])[:, None]          # (o_r, r)
    w1_full = np.zeros((o_r, c_in), np.float32)
    w1_full[:, right_src] = w1
    b1 = np.asarray(p["b1"]).reshape(o_r, 1).astype(np.float32)

    # depthwise: BN scale folded, taps flattened row-major (kh, kw)
    wdw = (np.asarray(p["wdw"]) *
           np.asarray(p["sdw"])[:, None, None]).reshape(o_r, 9).astype(np.float32)
    bdw = np.asarray(p["bdw"]).reshape(o_r, 1).astype(np.float32)

    # pw2: BN scale folded; concat + final shuffle folded via P_right / P_left
    w2 = np.asarray(p["w2"]) * np.asarray(p["s2"])[:, None]          # (o_r, o_r)
    b2 = np.asarray(p["b2"]).reshape(o_r, 1).astype(np.float32)
    p_right = np.zeros((c_out, o_r), np.float32)
    p_left = np.zeros((c_out, c_in), np.float32)
    for o in range(c_out):
        src = int(perm2[o])
        if src < l:
            p_left[o, int(left_src[src])] = 1.0
        else:
            p_right[o, src - l] = 1.0
    w2p = (p_right @ w2).astype(np.float32)
    b2p = (p_right @ b2).astype(np.float32)

    return tuple(jnp.asarray(a)
                 for a in (w1_full, b1, wdw, bdw, w2p, b2p, p_left))


def fuse_block_params(branches, in_ch, out_ch, c_ratio, groups):
    l = int(out_ch * c_ratio)
    units = [_fuse_unit(branches[0], in_ch, out_ch, l, groups, True)]
    for p in branches[1:]:                      # basic units: in == out == out_ch
        units.append(_fuse_unit(p, out_ch, out_ch, l, groups, False))
    return units


# ----------------------------------------------------------------------------
# Deterministic parameter construction (BN folded to inference scale/bias)
# ----------------------------------------------------------------------------
def _make_bn(key, c, eps=1e-5):
    k1, k2, k3, k4 = jax.random.split(key, 4)
    gamma = jax.random.uniform(k1, (c,), minval=0.5, maxval=1.5)
    beta = 0.1 * jax.random.normal(k2, (c,))
    mean = 0.1 * jax.random.normal(k3, (c,))
    var = jax.random.uniform(k4, (c,), minval=0.5, maxval=1.5)
    scale = gamma / jnp.sqrt(var + eps)
    bias = beta - mean * scale
    return scale.astype(jnp.float32), bias.astype(jnp.float32)


def _make_branch(key, cin, cout):
    ks = jax.random.split(key, 6)
    w1 = 0.3 * jax.random.normal(ks[0], (cout, cin), dtype=jnp.float32)
    s1, b1 = _make_bn(ks[1], cout)
    wdw = 0.3 * jax.random.normal(ks[2], (cout, 3, 3), dtype=jnp.float32)
    sdw, bdw = _make_bn(ks[3], cout)
    w2 = 0.3 * jax.random.normal(ks[4], (cout, cout), dtype=jnp.float32)
    s2, b2 = _make_bn(ks[5], cout)
    return dict(w1=w1, s1=s1, b1=b1, wdw=wdw, sdw=sdw, bdw=bdw,
                w2=w2, s2=s2, b2=b2)


def init_block_params(key, in_ch, out_ch, repeat, c_ratio=0.5):
    l = int(out_ch * c_ratio)
    keys = jax.random.split(key, repeat + 1)
    branches = [_make_branch(keys[0], in_ch - l, out_ch - l)]
    for i in range(repeat):
        branches.append(_make_branch(keys[i + 1], out_ch - l, out_ch - l))
    return branches


# ----------------------------------------------------------------------------
# Pure-JAX reference mirroring the PyTorch module structure (NCHW) literally.
# ----------------------------------------------------------------------------
def _ref_channel_shuffle(x, groups):
    n, c, h, w = x.shape
    x = x.reshape(n, groups, c // groups, h, w)
    x = jnp.transpose(x, (0, 2, 1, 3, 4))
    return x.reshape(n, c, h, w)


def _ref_branch(x_r, p):
    y = jnp.einsum("nchw,oc->nohw", x_r, p["w1"])
    y = y * p["s1"][None, :, None, None] + p["b1"][None, :, None, None]
    y = _hardswish(y)
    c = y.shape[1]
    y = jax.lax.conv_general_dilated(
        y, p["wdw"].reshape(c, 1, 3, 3), window_strides=(1, 1),
        padding=((1, 1), (1, 1)),
        dimension_numbers=("NCHW", "OIHW", "NCHW"),
        feature_group_count=c)
    y = y * p["sdw"][None, :, None, None] + p["bdw"][None, :, None, None]
    y = jnp.einsum("nchw,oc->nohw", y, p["w2"])
    y = y * p["s2"][None, :, None, None] + p["b2"][None, :, None, None]
    return _hardswish(y)


def ref_block(x, branches, out_ch, c_ratio, groups):
    l = int(out_ch * c_ratio)
    # ShuffleV2Reduce
    x = _ref_channel_shuffle(x, groups)
    x_l, x_r = x[:, :l], x[:, l:]
    x = jnp.concatenate([x_l, _ref_branch(x_r, branches[0])], axis=1)
    x = _ref_channel_shuffle(x, groups)
    # ShuffleV2Basic x repeat
    for p in branches[1:]:
        x_l, x_r = x[:, :l], x[:, l:]
        x = jnp.concatenate([x_l, _ref_branch(x_r, p)], axis=1)
        x = _ref_channel_shuffle(x, groups)
    return x


# ----------------------------------------------------------------------------
if __name__ == "__main__":
    N, IN_CH, OUT_CH, H, W = 2, 16, 8, 16, 16
    REPEAT, C_RATIO, GROUPS = 2, 0.5, 2

    key = jax.random.PRNGKey(0)
    kx, kp = jax.random.split(key)
    x = jax.random.normal(kx, (N, IN_CH, H, W), dtype=jnp.float32)   # NCHW

    branches = init_block_params(kp, IN_CH, OUT_CH, REPEAT, C_RATIO)
    fused = fuse_block_params(branches, IN_CH, OUT_CH, C_RATIO, GROUPS)
    masks = _make_tap_masks(H, W)

    out = shufflev2_reduce_block(x, fused, masks)
    out = jax.block_until_ready(out)

    ref = ref_block(x, branches, OUT_CH, C_RATIO, GROUPS)
    np.testing.assert_allclose(np.asarray(out), np.asarray(ref),
                               rtol=1e-4, atol=1e-4)
    assert out.shape == (N, OUT_CH, H, W)
    print("KERNEL_OK")
</pallas_src>

<mosaic_0001>
module attributes {stable_mosaic.version = 11 : i64} {
  func.func @_block_kernel(%arg0: i32, %arg1: memref<1x16x256xf32, #tpu.memory_space<vmem>>, %arg2: memref<9x256xf32, #tpu.memory_space<vmem>>, %arg3: memref<4x16xf32, #tpu.memory_space<vmem>>, %arg4: memref<4x1xf32, #tpu.memory_space<vmem>>, %arg5: memref<4x9xf32, #tpu.memory_space<vmem>>, %arg6: memref<4x1xf32, #tpu.memory_space<vmem>>, %arg7: memref<8x4xf32, #tpu.memory_space<vmem>>, %arg8: memref<8x1xf32, #tpu.memory_space<vmem>>, %arg9: memref<8x16xf32, #tpu.memory_space<vmem>>, %arg10: memref<4x8xf32, #tpu.memory_space<vmem>>, %arg11: memref<4x1xf32, #tpu.memory_space<vmem>>, %arg12: memref<4x9xf32, #tpu.memory_space<vmem>>, %arg13: memref<4x1xf32, #tpu.memory_space<vmem>>, %arg14: memref<8x4xf32, #tpu.memory_space<vmem>>, %arg15: memref<8x1xf32, #tpu.memory_space<vmem>>, %arg16: memref<8x8xf32, #tpu.memory_space<vmem>>, %arg17: memref<4x8xf32, #tpu.memory_space<vmem>>, %arg18: memref<4x1xf32, #tpu.memory_space<vmem>>, %arg19: memref<4x9xf32, #tpu.memory_space<vmem>>, %arg20: memref<4x1xf32, #tpu.memory_space<vmem>>, %arg21: memref<8x4xf32, #tpu.memory_space<vmem>>, %arg22: memref<8x1xf32, #tpu.memory_space<vmem>>, %arg23: memref<8x8xf32, #tpu.memory_space<vmem>>, %arg24: memref<1x8x256xf32, #tpu.memory_space<vmem>>) attributes {dimension_semantics = [#tpu.dimension_semantics<parallel>], iteration_bounds = array<i64: 2>, scalar_prefetch = 0 : i64, scratch_operands = 0 : i64, tpu.core_type = #tpu.core_type<tc>, window_params = [{transform_indices = @transform_0, window_bounds = array<i64: 1, 16, 256>}, {pipeline_mode = #tpu.pipeline_mode<synchronous>, transform_indices = @transform_1, window_bounds = array<i64: 9, 256>}, {pipeline_mode = #tpu.pipeline_mode<synchronous>, transform_indices = @transform_2, window_bounds = array<i64: 4, 16>}, {pipeline_mode = #tpu.pipeline_mode<synchronous>, transform_indices = @transform_3, window_bounds = array<i64: 4, 1>}, {pipeline_mode = #tpu.pipeline_mode<synchronous>, transform_indices = @transform_4, window_bounds = array<i64: 4, 9>}, {pipeline_mode = #tpu.pipeline_mode<synchronous>, transform_indices = @transform_5, window_bounds = array<i64: 4, 1>}, {pipeline_mode = #tpu.pipeline_mode<synchronous>, transform_indices = @transform_6, window_bounds = array<i64: 8, 4>}, {pipeline_mode = #tpu.pipeline_mode<synchronous>, transform_indices = @transform_7, window_bounds = array<i64: 8, 1>}, {pipeline_mode = #tpu.pipeline_mode<synchronous>, transform_indices = @transform_8, window_bounds = array<i64: 8, 16>}, {pipeline_mode = #tpu.pipeline_mode<synchronous>, transform_indices = @transform_9, window_bounds = array<i64: 4, 8>}, {pipeline_mode = #tpu.pipeline_mode<synchronous>, transform_indices = @transform_10, window_bounds = array<i64: 4, 1>}, {pipeline_mode = #tpu.pipeline_mode<synchronous>, transform_indices = @transform_11, window_bounds = array<i64: 4, 9>}, {pipeline_mode = #tpu.pipeline_mode<synchronous>, transform_indices = @transform_12, window_bounds = array<i64: 4, 1>}, {pipeline_mode = #tpu.pipeline_mode<synchronous>, transform_indices = @transform_13, window_bounds = array<i64: 8, 4>}, {pipeline_mode = #tpu.pipeline_mode<synchronous>, transform_indices = @transform_14, window_bounds = array<i64: 8, 1>}, {pipeline_mode = #tpu.pipeline_mode<synchronous>, transform_indices = @transform_15, window_bounds = array<i64: 8, 8>}, {pipeline_mode = #tpu.pipeline_mode<synchronous>, transform_indices = @transform_16, window_bounds = array<i64: 4, 8>}, {pipeline_mode = #tpu.pipeline_mode<synchronous>, transform_indices = @transform_17, window_bounds = array<i64: 4, 1>}, {pipeline_mode = #tpu.pipeline_mode<synchronous>, transform_indices = @transform_18, window_bounds = array<i64: 4, 9>}, {pipeline_mode = #tpu.pipeline_mode<synchronous>, transform_indices = @transform_19, window_bounds = array<i64: 4, 1>}, {pipeline_mode = #tpu.pipeline_mode<synchronous>, transform_indices = @transform_20, window_bounds = array<i64: 8, 4>}, {pipeline_mode = #tpu.pipeline_mode<synchronous>, transform_indices = @transform_21, window_bounds = array<i64: 8, 1>}, {pipeline_mode = #tpu.pipeline_mode<synchronous>, transform_indices = @transform_22, window_bounds = array<i64: 8, 8>}, {transform_indices = @transform_23, window_bounds = array<i64: 1, 8, 256>}]} {
    %c0 = arith.constant 0 : index
    %c0_0 = arith.constant 0 : index
    %c0_1 = arith.constant 0 : index
    %0 = vector.load %arg1[%c0, %c0_0, %c0_1] : memref<1x16x256xf32, #tpu.memory_space<vmem>>, vector<1x16x256xf32>
    %1 = vector.shape_cast %0 : vector<1x16x256xf32> to vector<16x256xf32>
    %c0_2 = arith.constant 0 : index
    %c0_3 = arith.constant 0 : index
    %2 = vector.load %arg2[%c0_2, %c0_3] : memref<9x256xf32, #tpu.memory_space<vmem>>, vector<9x256xf32>
    %c0_4 = arith.constant 0 : index
    %c0_5 = arith.constant 0 : index
    %3 = vector.load %arg3[%c0_4, %c0_5] : memref<4x16xf32, #tpu.memory_space<vmem>>, vector<4x16xf32>
    %cst = arith.constant dense<0.000000e+00> : vector<4x256xf32>
    %4 = tpu.matmul %3, %1, %cst {dimension_numbers = #tpu.dot_dimension_numbers<[1], [0], [0], [1], [0, 0, 1, 1], [], []>} : vector<4x16xf32>, vector<16x256xf32>, vector<4x256xf32> -> vector<4x256xf32>
    %c0_6 = arith.constant 0 : index
    %c0_7 = arith.constant 0 : index
    %5 = vector.load %arg4[%c0_6, %c0_7] : memref<4x1xf32, #tpu.memory_space<vmem>>, vector<4x1xf32>
    %6 = vector.broadcast %5 : vector<4x1xf32> to vector<4x256xf32>
    %7 = arith.addf %4, %6 : vector<4x256xf32>
    %cst_8 = arith.constant 3.000000e+00 : f32
    %8 = vector.broadcast %cst_8 : f32 to vector<4x256xf32>
    %9 = arith.addf %7, %8 : vector<4x256xf32>
    %cst_9 = arith.constant 0.000000e+00 : f32
    %cst_10 = arith.constant 6.000000e+00 : f32
    %10 = vector.broadcast %cst_9 : f32 to vector<4x256xf32>
    %11 = arith.maximumf %10, %9 : vector<4x256xf32>
    %12 = vector.broadcast %cst_10 : f32 to vector<4x256xf32>
    %13 = arith.minimumf %12, %11 : vector<4x256xf32>
    %14 = arith.mulf %7, %13 : vector<4x256xf32>
    %cst_11 = arith.constant 0.166666672 : f32
    %15 = vector.broadcast %cst_11 : f32 to vector<4x256xf32>
    %16 = arith.mulf %14, %15 : vector<4x256xf32>
    %c0_12 = arith.constant 0 : index
    %c0_13 = arith.constant 0 : index
    %17 = vector.load %arg5[%c0_12, %c0_13] : memref<4x9xf32, #tpu.memory_space<vmem>>, vector<4x9xf32>
    %cst_14 = arith.constant 0.000000e+00 : f32
    %18 = vector.broadcast %cst_14 : f32 to vector<4x256xf32>
    %c17_i32 = arith.constant 17 : i32
    %19 = tpu.dynamic_rotate %16 by %c17_i32 dim 1 : vector<4x256xf32>, i32 -> vector<4x256xf32>
    %20 = vector.extract_strided_slice %2 {offsets = [0, 0], sizes = [1, 256], strides = [1, 1]} : vector<9x256xf32> to vector<1x256xf32>
    %21 = vector.broadcast %20 : vector<1x256xf32> to vector<4x256xf32>
    %22 = arith.mulf %19, %21 : vector<4x256xf32>
    %23 = vector.extract_strided_slice %17 {offsets = [0, 0], sizes = [4, 1], strides = [1, 1]} : vector<4x9xf32> to vector<4x1xf32>
    %24 = vector.broadcast %23 : vector<4x1xf32> to vector<4x256xf32>
    %25 = arith.mulf %22, %24 : vector<4x256xf32>
    %26 = arith.addf %18, %25 : vector<4x256xf32>
    %c16_i32 = arith.constant 16 : i32
    %27 = tpu.dynamic_rotate %16 by %c16_i32 dim 1 : vector<4x256xf32>, i32 -> vector<4x256xf32>
    %28 = vector.extract_strided_slice %2 {offsets = [1, 0], sizes = [1, 256], strides = [1, 1]} : vector<9x256xf32> to vector<1x256xf32>
    %29 = vector.broadcast %28 : vector<1x256xf32> to vector<4x256xf32>
    %30 = arith.mulf %27, %29 : vector<4x256xf32>
    %31 = vector.extract_strided_slice %17 {offsets = [0, 1], sizes = [4, 1], strides = [1, 1]} : vector<4x9xf32> to vector<4x1xf32>
    %32 = vector.broadcast %31 : vector<4x1xf32> to vector<4x256xf32>
    %33 = arith.mulf %30, %32 : vector<4x256xf32>
    %34 = arith.addf %26, %33 : vector<4x256xf32>
    %c15_i32 = arith.constant 15 : i32
    %35 = tpu.dynamic_rotate %16 by %c15_i32 dim 1 : vector<4x256xf32>, i32 -> vector<4x256xf32>
    %36 = vector.extract_strided_slice %2 {offsets = [2, 0], sizes = [1, 256], strides = [1, 1]} : vector<9x256xf32> to vector<1x256xf32>
    %37 = vector.broadcast %36 : vector<1x256xf32> to vector<4x256xf32>
    %38 = arith.mulf %35, %37 : vector<4x256xf32>
    %39 = vector.extract_strided_slice %17 {offsets = [0, 2], sizes = [4, 1], strides = [1, 1]} : vector<4x9xf32> to vector<4x1xf32>
    %40 = vector.broadcast %39 : vector<4x1xf32> to vector<4x256xf32>
    %41 = arith.mulf %38, %40 : vector<4x256xf32>
    %42 = arith.addf %34, %41 : vector<4x256xf32>
    %c1_i32 = arith.constant 1 : i32
    %43 = tpu.dynamic_rotate %16 by %c1_i32 dim 1 : vector<4x256xf32>, i32 -> vector<4x256xf32>
    %44 = vector.extract_strided_slice %2 {offsets = [3, 0], sizes = [1, 256], strides = [1, 1]} : vector<9x256xf32> to vector<1x256xf32>
    %45 = vector.broadcast %44 : vector<1x256xf32> to vector<4x256xf32>
    %46 = arith.mulf %43, %45 : vector<4x256xf32>
    %47 = vector.extract_strided_slice %17 {offsets = [0, 3], sizes = [4, 1], strides = [1, 1]} : vector<4x9xf32> to vector<4x1xf32>
    %48 = vector.broadcast %47 : vector<4x1xf32> to vector<4x256xf32>
    %49 = arith.mulf %46, %48 : vector<4x256xf32>
    %50 = arith.addf %42, %49 : vector<4x256xf32>
    %51 = vector.extract_strided_slice %2 {offsets = [4, 0], sizes = [1, 256], strides = [1, 1]} : vector<9x256xf32> to vector<1x256xf32>
    %52 = vector.broadcast %51 : vector<1x256xf32> to vector<4x256xf32>
    %53 = arith.mulf %16, %52 : vector<4x256xf32>
    %54 = vector.extract_strided_slice %17 {offsets = [0, 4], sizes = [4, 1], strides = [1, 1]} : vector<4x9xf32> to vector<4x1xf32>
    %55 = vector.broadcast %54 : vector<4x1xf32> to vector<4x256xf32>
    %56 = arith.mulf %53, %55 : vector<4x256xf32>
    %57 = arith.addf %50, %56 : vector<4x256xf32>
    %c255_i32 = arith.constant 255 : i32
    %58 = tpu.dynamic_rotate %16 by %c255_i32 dim 1 : vector<4x256xf32>, i32 -> vector<4x256xf32>
    %59 = vector.extract_strided_slice %2 {offsets = [5, 0], sizes = [1, 256], strides = [1, 1]} : vector<9x256xf32> to vector<1x256xf32>
    %60 = vector.broadcast %59 : vector<1x256xf32> to vector<4x256xf32>
    %61 = arith.mulf %58, %60 : vector<4x256xf32>
    %62 = vector.extract_strided_slice %17 {offsets = [0, 5], sizes = [4, 1], strides = [1, 1]} : vector<4x9xf32> to vector<4x1xf32>
    %63 = vector.broadcast %62 : vector<4x1xf32> to vector<4x256xf32>
    %64 = arith.mulf %61, %63 : vector<4x256xf32>
    %65 = arith.addf %57, %64 : vector<4x256xf32>
    %c241_i32 = arith.constant 241 : i32
    %66 = tpu.dynamic_rotate %16 by %c241_i32 dim 1 : vector<4x256xf32>, i32 -> vector<4x256xf32>
    %67 = vector.extract_strided_slice %2 {offsets = [6, 0], sizes = [1, 256], strides = [1, 1]} : vector<9x256xf32> to vector<1x256xf32>
    %68 = vector.broadcast %67 : vector<1x256xf32> to vector<4x256xf32>
    %69 = arith.mulf %66, %68 : vector<4x256xf32>
    %70 = vector.extract_strided_slice %17 {offsets = [0, 6], sizes = [4, 1], strides = [1, 1]} : vector<4x9xf32> to vector<4x1xf32>
    %71 = vector.broadcast %70 : vector<4x1xf32> to vector<4x256xf32>
    %72 = arith.mulf %69, %71 : vector<4x256xf32>
    %73 = arith.addf %65, %72 : vector<4x256xf32>
    %c240_i32 = arith.constant 240 : i32
    %74 = tpu.dynamic_rotate %16 by %c240_i32 dim 1 : vector<4x256xf32>, i32 -> vector<4x256xf32>
    %75 = vector.extract_strided_slice %2 {offsets = [7, 0], sizes = [1, 256], strides = [1, 1]} : vector<9x256xf32> to vector<1x256xf32>
    %76 = vector.broadcast %75 : vector<1x256xf32> to vector<4x256xf32>
    %77 = arith.mulf %74, %76 : vector<4x256xf32>
    %78 = vector.extract_strided_slice %17 {offsets = [0, 7], sizes = [4, 1], strides = [1, 1]} : vector<4x9xf32> to vector<4x1xf32>
    %79 = vector.broadcast %78 : vector<4x1xf32> to vector<4x256xf32>
    %80 = arith.mulf %77, %79 : vector<4x256xf32>
    %81 = arith.addf %73, %80 : vector<4x256xf32>
    %c239_i32 = arith.constant 239 : i32
    %82 = tpu.dynamic_rotate %16 by %c239_i32 dim 1 : vector<4x256xf32>, i32 -> vector<4x256xf32>
    %83 = vector.extract_strided_slice %2 {offsets = [8, 0], sizes = [1, 256], strides = [1, 1]} : vector<9x256xf32> to vector<1x256xf32>
    %84 = vector.broadcast %83 : vector<1x256xf32> to vector<4x256xf32>
    %85 = arith.mulf %82, %84 : vector<4x256xf32>
    %86 = vector.extract_strided_slice %17 {offsets = [0, 8], sizes = [4, 1], strides = [1, 1]} : vector<4x9xf32> to vector<4x1xf32>
    %87 = vector.broadcast %86 : vector<4x1xf32> to vector<4x256xf32>
    %88 = arith.mulf %85, %87 : vector<4x256xf32>
    %89 = arith.addf %81, %88 : vector<4x256xf32>
    %c0_15 = arith.constant 0 : index
    %c0_16 = arith.constant 0 : index
    %90 = vector.load %arg6[%c0_15, %c0_16] : memref<4x1xf32, #tpu.memory_space<vmem>>, vector<4x1xf32>
    %91 = vector.broadcast %90 : vector<4x1xf32> to vector<4x256xf32>
    %92 = arith.addf %89, %91 : vector<4x256xf32>
    %c0_17 = arith.constant 0 : index
    %c0_18 = arith.constant 0 : index
    %93 = vector.load %arg7[%c0_17, %c0_18] : memref<8x4xf32, #tpu.memory_space<vmem>>, vector<8x4xf32>
    %cst_19 = arith.constant dense<0.000000e+00> : vector<8x256xf32>
    %94 = tpu.matmul %93, %92, %cst_19 {dimension_numbers = #tpu.dot_dimension_numbers<[1], [0], [0], [1], [0, 0, 1, 1], [], []>} : vector<8x4xf32>, vector<4x256xf32>, vector<8x256xf32> -> vector<8x256xf32>
    %c0_20 = arith.constant 0 : index
    %c0_21 = arith.constant 0 : index
    %95 = vector.load %arg8[%c0_20, %c0_21] : memref<8x1xf32, #tpu.memory_space<vmem>>, vector<8x1xf32>
    %96 = vector.broadcast %95 : vector<8x1xf32> to vector<8x256xf32>
    %97 = arith.addf %94, %96 : vector<8x256xf32>
    %cst_22 = arith.constant 3.000000e+00 : f32
    %98 = vector.broadcast %cst_22 : f32 to vector<8x256xf32>
    %99 = arith.addf %97, %98 : vector<8x256xf32>
    %cst_23 = arith.constant 0.000000e+00 : f32
    %cst_24 = arith.constant 6.000000e+00 : f32
    %100 = vector.broadcast %cst_23 : f32 to vector<8x256xf32>
    %101 = arith.maximumf %100, %99 : vector<8x256xf32>
    %102 = vector.broadcast %cst_24 : f32 to vector<8x256xf32>
    %103 = arith.minimumf %102, %101 : vector<8x256xf32>
    %104 = arith.mulf %97, %103 : vector<8x256xf32>
    %cst_25 = arith.constant 0.166666672 : f32
    %105 = vector.broadcast %cst_25 : f32 to vector<8x256xf32>
    %106 = arith.mulf %104, %105 : vector<8x256xf32>
    %c0_26 = arith.constant 0 : index
    %c0_27 = arith.constant 0 : index
    %107 = vector.load %arg9[%c0_26, %c0_27] : memref<8x16xf32, #tpu.memory_space<vmem>>, vector<8x16xf32>
    %cst_28 = arith.constant dense<0.000000e+00> : vector<8x256xf32>
    %108 = tpu.matmul %107, %1, %cst_28 {dimension_numbers = #tpu.dot_dimension_numbers<[1], [0], [0], [1], [0, 0, 1, 1], [], []>} : vector<8x16xf32>, vector<16x256xf32>, vector<8x256xf32> -> vector<8x256xf32>
    %109 = arith.addf %106, %108 : vector<8x256xf32>
    %c0_29 = arith.constant 0 : index
    %c0_30 = arith.constant 0 : index
    %110 = vector.load %arg10[%c0_29, %c0_30] : memref<4x8xf32, #tpu.memory_space<vmem>>, vector<4x8xf32>
    %cst_31 = arith.constant dense<0.000000e+00> : vector<4x256xf32>
    %111 = tpu.matmul %110, %109, %cst_31 {dimension_numbers = #tpu.dot_dimension_numbers<[1], [0], [0], [1], [0, 0, 1, 1], [], []>} : vector<4x8xf32>, vector<8x256xf32>, vector<4x256xf32> -> vector<4x256xf32>
    %c0_32 = arith.constant 0 : index
    %c0_33 = arith.constant 0 : index
    %112 = vector.load %arg11[%c0_32, %c0_33] : memref<4x1xf32, #tpu.memory_space<vmem>>, vector<4x1xf32>
    %113 = vector.broadcast %112 : vector<4x1xf32> to vector<4x256xf32>
    %114 = arith.addf %111, %113 : vector<4x256xf32>
    %cst_34 = arith.constant 3.000000e+00 : f32
    %115 = vector.broadcast %cst_34 : f32 to vector<4x256xf32>
    %116 = arith.addf %114, %115 : vector<4x256xf32>
    %cst_35 = arith.constant 0.000000e+00 : f32
    %cst_36 = arith.constant 6.000000e+00 : f32
    %117 = vector.broadcast %cst_35 : f32 to vector<4x256xf32>
    %118 = arith.maximumf %117, %116 : vector<4x256xf32>
    %119 = vector.broadcast %cst_36 : f32 to vector<4x256xf32>
    %120 = arith.minimumf %119, %118 : vector<4x256xf32>
    %121 = arith.mulf %114, %120 : vector<4x256xf32>
    %cst_37 = arith.constant 0.166666672 : f32
    %122 = vector.broadcast %cst_37 : f32 to vector<4x256xf32>
    %123 = arith.mulf %121, %122 : vector<4x256xf32>
    %c0_38 = arith.constant 0 : index
    %c0_39 = arith.constant 0 : index
    %124 = vector.load %arg12[%c0_38, %c0_39] : memref<4x9xf32, #tpu.memory_space<vmem>>, vector<4x9xf32>
    %cst_40 = arith.constant 0.000000e+00 : f32
    %125 = vector.broadcast %cst_40 : f32 to vector<4x256xf32>
    %c17_i32_41 = arith.constant 17 : i32
    %126 = tpu.dynamic_rotate %123 by %c17_i32_41 dim 1 : vector<4x256xf32>, i32 -> vector<4x256xf32>
    %127 = vector.extract_strided_slice %2 {offsets = [0, 0], sizes = [1, 256], strides = [1, 1]} : vector<9x256xf32> to vector<1x256xf32>
    %128 = vector.broadcast %127 : vector<1x256xf32> to vector<4x256xf32>
    %129 = arith.mulf %126, %128 : vector<4x256xf32>
    %130 = vector.extract_strided_slice %124 {offsets = [0, 0], sizes = [4, 1], strides = [1, 1]} : vector<4x9xf32> to vector<4x1xf32>
    %131 = vector.broadcast %130 : vector<4x1xf32> to vector<4x256xf32>
    %132 = arith.mulf %129, %131 : vector<4x256xf32>
    %133 = arith.addf %125, %132 : vector<4x256xf32>
    %c16_i32_42 = arith.constant 16 : i32
    %134 = tpu.dynamic_rotate %123 by %c16_i32_42 dim 1 : vector<4x256xf32>, i32 -> vector<4x256xf32>
    %135 = vector.extract_strided_slice %2 {offsets = [1, 0], sizes = [1, 256], strides = [1, 1]} : vector<9x256xf32> to vector<1x256xf32>
    %136 = vector.broadcast %135 : vector<1x256xf32> to vector<4x256xf32>
    %137 = arith.mulf %134, %136 : vector<4x256xf32>
    %138 = vector.extract_strided_slice %124 {offsets = [0, 1], sizes = [4, 1], strides = [1, 1]} : vector<4x9xf32> to vector<4x1xf32>
    %139 = vector.broadcast %138 : vector<4x1xf32> to vector<4x256xf32>
    %140 = arith.mulf %137, %139 : vector<4x256xf32>
    %141 = arith.addf %133, %140 : vector<4x256xf32>
    %c15_i32_43 = arith.constant 15 : i32
    %142 = tpu.dynamic_rotate %123 by %c15_i32_43 dim 1 : vector<4x256xf32>, i32 -> vector<4x256xf32>
    %143 = vector.extract_strided_slice %2 {offsets = [2, 0], sizes = [1, 256], strides = [1, 1]} : vector<9x256xf32> to vector<1x256xf32>
    %144 = vector.broadcast %143 : vector<1x256xf32> to vector<4x256xf32>
    %145 = arith.mulf %142, %144 : vector<4x256xf32>
    %146 = vector.extract_strided_slice %124 {offsets = [0, 2], sizes = [4, 1], strides = [1, 1]} : vector<4x9xf32> to vector<4x1xf32>
    %147 = vector.broadcast %146 : vector<4x1xf32> to vector<4x256xf32>
    %148 = arith.mulf %145, %147 : vector<4x256xf32>
    %149 = arith.addf %141, %148 : vector<4x256xf32>
    %c1_i32_44 = arith.constant 1 : i32
    %150 = tpu.dynamic_rotate %123 by %c1_i32_44 dim 1 : vector<4x256xf32>, i32 -> vector<4x256xf32>
    %151 = vector.extract_strided_slice %2 {offsets = [3, 0], sizes = [1, 256], strides = [1, 1]} : vector<9x256xf32> to vector<1x256xf32>
    %152 = vector.broadcast %151 : vector<1x256xf32> to vector<4x256xf32>
    %153 = arith.mulf %150, %152 : vector<4x256xf32>
    %154 = vector.extract_strided_slice %124 {offsets = [0, 3], sizes = [4, 1], strides = [1, 1]} : vector<4x9xf32> to vector<4x1xf32>
    %155 = vector.broadcast %154 : vector<4x1xf32> to vector<4x256xf32>
    %156 = arith.mulf %153, %155 : vector<4x256xf32>
    %157 = arith.addf %149, %156 : vector<4x256xf32>
    %158 = vector.extract_strided_slice %2 {offsets = [4, 0], sizes = [1, 256], strides = [1, 1]} : vector<9x256xf32> to vector<1x256xf32>
    %159 = vector.broadcast %158 : vector<1x256xf32> to vector<4x256xf32>
    %160 = arith.mulf %123, %159 : vector<4x256xf32>
    %161 = vector.extract_strided_slice %124 {offsets = [0, 4], sizes = [4, 1], strides = [1, 1]} : vector<4x9xf32> to vector<4x1xf32>
    %162 = vector.broadcast %161 : vector<4x1xf32> to vector<4x256xf32>
    %163 = arith.mulf %160, %162 : vector<4x256xf32>
    %164 = arith.addf %157, %163 : vector<4x256xf32>
    %c255_i32_45 = arith.constant 255 : i32
    %165 = tpu.dynamic_rotate %123 by %c255_i32_45 dim 1 : vector<4x256xf32>, i32 -> vector<4x256xf32>
    %166 = vector.extract_strided_slice %2 {offsets = [5, 0], sizes = [1, 256], strides = [1, 1]} : vector<9x256xf32> to vector<1x256xf32>
    %167 = vector.broadcast %166 : vector<1x256xf32> to vector<4x256xf32>
    %168 = arith.mulf %165, %167 : vector<4x256xf32>
    %169 = vector.extract_strided_slice %124 {offsets = [0, 5], sizes = [4, 1], strides = [1, 1]} : vector<4x9xf32> to vector<4x1xf32>
    %170 = vector.broadcast %169 : vector<4x1xf32> to vector<4x256xf32>
    %171 = arith.mulf %168, %170 : vector<4x256xf32>
    %172 = arith.addf %164, %171 : vector<4x256xf32>
    %c241_i32_46 = arith.constant 241 : i32
    %173 = tpu.dynamic_rotate %123 by %c241_i32_46 dim 1 : vector<4x256xf32>, i32 -> vector<4x256xf32>
    %174 = vector.extract_strided_slice %2 {offsets = [6, 0], sizes = [1, 256], strides = [1, 1]} : vector<9x256xf32> to vector<1x256xf32>
    %175 = vector.broadcast %174 : vector<1x256xf32> to vector<4x256xf32>
    %176 = arith.mulf %173, %175 : vector<4x256xf32>
    %177 = vector.extract_strided_slice %124 {offsets = [0, 6], sizes = [4, 1], strides = [1, 1]} : vector<4x9xf32> to vector<4x1xf32>
    %178 = vector.broadcast %177 : vector<4x1xf32> to vector<4x256xf32>
    %179 = arith.mulf %176, %178 : vector<4x256xf32>
    %180 = arith.addf %172, %179 : vector<4x256xf32>
    %c240_i32_47 = arith.constant 240 : i32
    %181 = tpu.dynamic_rotate %123 by %c240_i32_47 dim 1 : vector<4x256xf32>, i32 -> vector<4x256xf32>
    %182 = vector.extract_strided_slice %2 {offsets = [7, 0], sizes = [1, 256], strides = [1, 1]} : vector<9x256xf32> to vector<1x256xf32>
    %183 = vector.broadcast %182 : vector<1x256xf32> to vector<4x256xf32>
    %184 = arith.mulf %181, %183 : vector<4x256xf32>
    %185 = vector.extract_strided_slice %124 {offsets = [0, 7], sizes = [4, 1], strides = [1, 1]} : vector<4x9xf32> to vector<4x1xf32>
    %186 = vector.broadcast %185 : vector<4x1xf32> to vector<4x256xf32>
    %187 = arith.mulf %184, %186 : vector<4x256xf32>
    %188 = arith.addf %180, %187 : vector<4x256xf32>
    %c239_i32_48 = arith.constant 239 : i32
    %189 = tpu.dynamic_rotate %123 by %c239_i32_48 dim 1 : vector<4x256xf32>, i32 -> vector<4x256xf32>
    %190 = vector.extract_strided_slice %2 {offsets = [8, 0], sizes = [1, 256], strides = [1, 1]} : vector<9x256xf32> to vector<1x256xf32>
    %191 = vector.broadcast %190 : vector<1x256xf32> to vector<4x256xf32>
    %192 = arith.mulf %189, %191 : vector<4x256xf32>
    %193 = vector.extract_strided_slice %124 {offsets = [0, 8], sizes = [4, 1], strides = [1, 1]} : vector<4x9xf32> to vector<4x1xf32>
    %194 = vector.broadcast %193 : vector<4x1xf32> to vector<4x256xf32>
    %195 = arith.mulf %192, %194 : vector<4x256xf32>
    %196 = arith.addf %188, %195 : vector<4x256xf32>
    %c0_49 = arith.constant 0 : index
    %c0_50 = arith.constant 0 : index
    %197 = vector.load %arg13[%c0_49, %c0_50] : memref<4x1xf32, #tpu.memory_space<vmem>>, vector<4x1xf32>
    %198 = vector.broadcast %197 : vector<4x1xf32> to vector<4x256xf32>
    %199 = arith.addf %196, %198 : vector<4x256xf32>
    %c0_51 = arith.constant 0 : index
    %c0_52 = arith.constant 0 : index
    %200 = vector.load %arg14[%c0_51, %c0_52] : memref<8x4xf32, #tpu.memory_space<vmem>>, vector<8x4xf32>
    %cst_53 = arith.constant dense<0.000000e+00> : vector<8x256xf32>
    %201 = tpu.matmul %200, %199, %cst_53 {dimension_numbers = #tpu.dot_dimension_numbers<[1], [0], [0], [1], [0, 0, 1, 1], [], []>} : vector<8x4xf32>, vector<4x256xf32>, vector<8x256xf32> -> vector<8x256xf32>
    %c0_54 = arith.constant 0 : index
    %c0_55 = arith.constant 0 : index
    %202 = vector.load %arg15[%c0_54, %c0_55] : memref<8x1xf32, #tpu.memory_space<vmem>>, vector<8x1xf32>
    %203 = vector.broadcast %202 : vector<8x1xf32> to vector<8x256xf32>
    %204 = arith.addf %201, %203 : vector<8x256xf32>
    %cst_56 = arith.constant 3.000000e+00 : f32
    %205 = vector.broadcast %cst_56 : f32 to vector<8x256xf32>
    %206 = arith.addf %204, %205 : vector<8x256xf32>
    %cst_57 = arith.constant 0.000000e+00 : f32
    %cst_58 = arith.constant 6.000000e+00 : f32
    %207 = vector.broadcast %cst_57 : f32 to vector<8x256xf32>
    %208 = arith.maximumf %207, %206 : vector<8x256xf32>
    %209 = vector.broadcast %cst_58 : f32 to vector<8x256xf32>
    %210 = arith.minimumf %209, %208 : vector<8x256xf32>
    %211 = arith.mulf %204, %210 : vector<8x256xf32>
    %cst_59 = arith.constant 0.166666672 : f32
    %212 = vector.broadcast %cst_59 : f32 to vector<8x256xf32>
    %213 = arith.mulf %211, %212 : vector<8x256xf32>
    %c0_60 = arith.constant 0 : index
    %c0_61 = arith.constant 0 : index
    %214 = vector.load %arg16[%c0_60, %c0_61] : memref<8x8xf32, #tpu.memory_space<vmem>>, vector<8x8xf32>
    %cst_62 = arith.constant dense<0.000000e+00> : vector<8x256xf32>
    %215 = tpu.matmul %214, %109, %cst_62 {dimension_numbers = #tpu.dot_dimension_numbers<[1], [0], [0], [1], [0, 0, 1, 1], [], []>} : vector<8x8xf32>, vector<8x256xf32>, vector<8x256xf32> -> vector<8x256xf32>
    %216 = arith.addf %213, %215 : vector<8x256xf32>
    %c0_63 = arith.constant 0 : index
    %c0_64 = arith.constant 0 : index
    %217 = vector.load %arg17[%c0_63, %c0_64] : memref<4x8xf32, #tpu.memory_space<vmem>>, vector<4x8xf32>
    %cst_65 = arith.constant dense<0.000000e+00> : vector<4x256xf32>
    %218 = tpu.matmul %217, %216, %cst_65 {dimension_numbers = #tpu.dot_dimension_numbers<[1], [0], [0], [1], [0, 0, 1, 1], [], []>} : vector<4x8xf32>, vector<8x256xf32>, vector<4x256xf32> -> vector<4x256xf32>
    %c0_66 = arith.constant 0 : index
    %c0_67 = arith.constant 0 : index
    %219 = vector.load %arg18[%c0_66, %c0_67] : memref<4x1xf32, #tpu.memory_space<vmem>>, vector<4x1xf32>
    %220 = vector.broadcast %219 : vector<4x1xf32> to vector<4x256xf32>
    %221 = arith.addf %218, %220 : vector<4x256xf32>
    %cst_68 = arith.constant 3.000000e+00 : f32
    %222 = vector.broadcast %cst_68 : f32 to vector<4x256xf32>
    %223 = arith.addf %221, %222 : vector<4x256xf32>
    %cst_69 = arith.constant 0.000000e+00 : f32
    %cst_70 = arith.constant 6.000000e+00 : f32
    %224 = vector.broadcast %cst_69 : f32 to vector<4x256xf32>
    %225 = arith.maximumf %224, %223 : vector<4x256xf32>
    %226 = vector.broadcast %cst_70 : f32 to vector<4x256xf32>
    %227 = arith.minimumf %226, %225 : vector<4x256xf32>
    %228 = arith.mulf %221, %227 : vector<4x256xf32>
    %cst_71 = arith.constant 0.166666672 : f32
    %229 = vector.broadcast %cst_71 : f32 to vector<4x256xf32>
    %230 = arith.mulf %228, %229 : vector<4x256xf32>
    %c0_72 = arith.constant 0 : index
    %c0_73 = arith.constant 0 : index
    %231 = vector.load %arg19[%c0_72, %c0_73] : memref<4x9xf32, #tpu.memory_space<vmem>>, vector<4x9xf32>
    %cst_74 = arith.constant 0.000000e+00 : f32
    %232 = vector.broadcast %cst_74 : f32 to vector<4x256xf32>
    %c17_i32_75 = arith.constant 17 : i32
    %233 = tpu.dynamic_rotate %230 by %c17_i32_75 dim 1 : vector<4x256xf32>, i32 -> vector<4x256xf32>
    %234 = vector.extract_strided_slice %2 {offsets = [0, 0], sizes = [1, 256], strides = [1, 1]} : vector<9x256xf32> to vector<1x256xf32>
    %235 = vector.broadcast %234 : vector<1x256xf32> to vector<4x256xf32>
    %236 = arith.mulf %233, %235 : vector<4x256xf32>
    %237 = vector.extract_strided_slice %231 {offsets = [0, 0], sizes = [4, 1], strides = [1, 1]} : vector<4x9xf32> to vector<4x1xf32>
    %238 = vector.broadcast %237 : vector<4x1xf32> to vector<4x256xf32>
    %239 = arith.mulf %236, %238 : vector<4x256xf32>
    %240 = arith.addf %232, %239 : vector<4x256xf32>
    %c16_i32_76 = arith.constant 16 : i32
    %241 = tpu.dynamic_rotate %230 by %c16_i32_76 dim 1 : vector<4x256xf32>, i32 -> vector<4x256xf32>
    %242 = vector.extract_strided_slice %2 {offsets = [1, 0], sizes = [1, 256], strides = [1, 1]} : vector<9x256xf32> to vector<1x256xf32>
    %243 = vector.broadcast %242 : vector<1x256xf32> to vector<4x256xf32>
    %244 = arith.mulf %241, %243 : vector<4x256xf32>
    %245 = vector.extract_strided_slice %231 {offsets = [0, 1], sizes = [4, 1], strides = [1, 1]} : vector<4x9xf32> to vector<4x1xf32>
    %246 = vector.broadcast %245 : vector<4x1xf32> to vector<4x256xf32>
    %247 = arith.mulf %244, %246 : vector<4x256xf32>
    %248 = arith.addf %240, %247 : vector<4x256xf32>
    %c15_i32_77 = arith.constant 15 : i32
    %249 = tpu.dynamic_rotate %230 by %c15_i32_77 dim 1 : vector<4x256xf32>, i32 -> vector<4x256xf32>
    %250 = vector.extract_strided_slice %2 {offsets = [2, 0], sizes = [1, 256], strides = [1, 1]} : vector<9x256xf32> to vector<1x256xf32>
    %251 = vector.broadcast %250 : vector<1x256xf32> to vector<4x256xf32>
    %252 = arith.mulf %249, %251 : vector<4x256xf32>
    %253 = vector.extract_strided_slice %231 {offsets = [0, 2], sizes = [4, 1], strides = [1, 1]} : vector<4x9xf32> to vector<4x1xf32>
    %254 = vector.broadcast %253 : vector<4x1xf32> to vector<4x256xf32>
    %255 = arith.mulf %252, %254 : vector<4x256xf32>
    %256 = arith.addf %248, %255 : vector<4x256xf32>
    %c1_i32_78 = arith.constant 1 : i32
    %257 = tpu.dynamic_rotate %230 by %c1_i32_78 dim 1 : vector<4x256xf32>, i32 -> vector<4x256xf32>
    %258 = vector.extract_strided_slice %2 {offsets = [3, 0], sizes = [1, 256], strides = [1, 1]} : vector<9x256xf32> to vector<1x256xf32>
    %259 = vector.broadcast %258 : vector<1x256xf32> to vector<4x256xf32>
    %260 = arith.mulf %257, %259 : vector<4x256xf32>
    %261 = vector.extract_strided_slice %231 {offsets = [0, 3], sizes = [4, 1], strides = [1, 1]} : vector<4x9xf32> to vector<4x1xf32>
    %262 = vector.broadcast %261 : vector<4x1xf32> to vector<4x256xf32>
    %263 = arith.mulf %260, %262 : vector<4x256xf32>
    %264 = arith.addf %256, %263 : vector<4x256xf32>
    %265 = vector.extract_strided_slice %2 {offsets = [4, 0], sizes = [1, 256], strides = [1, 1]} : vector<9x256xf32> to vector<1x256xf32>
    %266 = vector.broadcast %265 : vector<1x256xf32> to vector<4x256xf32>
    %267 = arith.mulf %230, %266 : vector<4x256xf32>
    %268 = vector.extract_strided_slice %231 {offsets = [0, 4], sizes = [4, 1], strides = [1, 1]} : vector<4x9xf32> to vector<4x1xf32>
    %269 = vector.broadcast %268 : vector<4x1xf32> to vector<4x256xf32>
    %270 = arith.mulf %267, %269 : vector<4x256xf32>
    %271 = arith.addf %264, %270 : vector<4x256xf32>
    %c255_i32_79 = arith.constant 255 : i32
    %272 = tpu.dynamic_rotate %230 by %c255_i32_79 dim 1 : vector<4x256xf32>, i32 -> vector<4x256xf32>
    %273 = vector.extract_strided_slice %2 {offsets = [5, 0], sizes = [1, 256], strides = [1, 1]} : vector<9x256xf32> to vector<1x256xf32>
    %274 = vector.broadcast %273 : vector<1x256xf32> to vector<4x256xf32>
    %275 = arith.mulf %272, %274 : vector<4x256xf32>
    %276 = vector.extract_strided_slice %231 {offsets = [0, 5], sizes = [4, 1], strides = [1, 1]} : vector<4x9xf32> to vector<4x1xf32>
    %277 = vector.broadcast %276 : vector<4x1xf32> to vector<4x256xf32>
    %278 = arith.mulf %275, %277 : vector<4x256xf32>
    %279 = arith.addf %271, %278 : vector<4x256xf32>
    %c241_i32_80 = arith.constant 241 : i32
    %280 = tpu.dynamic_rotate %230 by %c241_i32_80 dim 1 : vector<4x256xf32>, i32 -> vector<4x256xf32>
    %281 = vector.extract_strided_slice %2 {offsets = [6, 0], sizes = [1, 256], strides = [1, 1]} : vector<9x256xf32> to vector<1x256xf32>
    %282 = vector.broadcast %281 : vector<1x256xf32> to vector<4x256xf32>
    %283 = arith.mulf %280, %282 : vector<4x256xf32>
    %284 = vector.extract_strided_slice %231 {offsets = [0, 6], sizes = [4, 1], strides = [1, 1]} : vector<4x9xf32> to vector<4x1xf32>
    %285 = vector.broadcast %284 : vector<4x1xf32> to vector<4x256xf32>
    %286 = arith.mulf %283, %285 : vector<4x256xf32>
    %287 = arith.addf %279, %286 : vector<4x256xf32>
    %c240_i32_81 = arith.constant 240 : i32
    %288 = tpu.dynamic_rotate %230 by %c240_i32_81 dim 1 : vector<4x256xf32>, i32 -> vector<4x256xf32>
    %289 = vector.extract_strided_slice %2 {offsets = [7, 0], sizes = [1, 256], strides = [1, 1]} : vector<9x256xf32> to vector<1x256xf32>
    %290 = vector.broadcast %289 : vector<1x256xf32> to vector<4x256xf32>
    %291 = arith.mulf %288, %290 : vector<4x256xf32>
    %292 = vector.extract_strided_slice %231 {offsets = [0, 7], sizes = [4, 1], strides = [1, 1]} : vector<4x9xf32> to vector<4x1xf32>
    %293 = vector.broadcast %292 : vector<4x1xf32> to vector<4x256xf32>
    %294 = arith.mulf %291, %293 : vector<4x256xf32>
    %295 = arith.addf %287, %294 : vector<4x256xf32>
    %c239_i32_82 = arith.constant 239 : i32
    %296 = tpu.dynamic_rotate %230 by %c239_i32_82 dim 1 : vector<4x256xf32>, i32 -> vector<4x256xf32>
    %297 = vector.extract_strided_slice %2 {offsets = [8, 0], sizes = [1, 256], strides = [1, 1]} : vector<9x256xf32> to vector<1x256xf32>
    %298 = vector.broadcast %297 : vector<1x256xf32> to vector<4x256xf32>
    %299 = arith.mulf %296, %298 : vector<4x256xf32>
    %300 = vector.extract_strided_slice %231 {offsets = [0, 8], sizes = [4, 1], strides = [1, 1]} : vector<4x9xf32> to vector<4x1xf32>
    %301 = vector.broadcast %300 : vector<4x1xf32> to vector<4x256xf32>
    %302 = arith.mulf %299, %301 : vector<4x256xf32>
    %303 = arith.addf %295, %302 : vector<4x256xf32>
    %c0_83 = arith.constant 0 : index
    %c0_84 = arith.constant 0 : index
    %304 = vector.load %arg20[%c0_83, %c0_84] : memref<4x1xf32, #tpu.memory_space<vmem>>, vector<4x1xf32>
    %305 = vector.broadcast %304 : vector<4x1xf32> to vector<4x256xf32>
    %306 = arith.addf %303, %305 : vector<4x256xf32>
    %c0_85 = arith.constant 0 : index
    %c0_86 = arith.constant 0 : index
    %307 = vector.load %arg21[%c0_85, %c0_86] : memref<8x4xf32, #tpu.memory_space<vmem>>, vector<8x4xf32>
    %cst_87 = arith.constant dense<0.000000e+00> : vector<8x256xf32>
    %308 = tpu.matmul %307, %306, %cst_87 {dimension_numbers = #tpu.dot_dimension_numbers<[1], [0], [0], [1], [0, 0, 1, 1], [], []>} : vector<8x4xf32>, vector<4x256xf32>, vector<8x256xf32> -> vector<8x256xf32>
    %c0_88 = arith.constant 0 : index
    %c0_89 = arith.constant 0 : index
    %309 = vector.load %arg22[%c0_88, %c0_89] : memref<8x1xf32, #tpu.memory_space<vmem>>, vector<8x1xf32>
    %310 = vector.broadcast %309 : vector<8x1xf32> to vector<8x256xf32>
    %311 = arith.addf %308, %310 : vector<8x256xf32>
    %cst_90 = arith.constant 3.000000e+00 : f32
    %312 = vector.broadcast %cst_90 : f32 to vector<8x256xf32>
    %313 = arith.addf %311, %312 : vector<8x256xf32>
    %cst_91 = arith.constant 0.000000e+00 : f32
    %cst_92 = arith.constant 6.000000e+00 : f32
    %314 = vector.broadcast %cst_91 : f32 to vector<8x256xf32>
    %315 = arith.maximumf %314, %313 : vector<8x256xf32>
    %316 = vector.broadcast %cst_92 : f32 to vector<8x256xf32>
    %317 = arith.minimumf %316, %315 : vector<8x256xf32>
    %318 = arith.mulf %311, %317 : vector<8x256xf32>
    %cst_93 = arith.constant 0.166666672 : f32
    %319 = vector.broadcast %cst_93 : f32 to vector<8x256xf32>
    %320 = arith.mulf %318, %319 : vector<8x256xf32>
    %c0_94 = arith.constant 0 : index
    %c0_95 = arith.constant 0 : index
    %321 = vector.load %arg23[%c0_94, %c0_95] : memref<8x8xf32, #tpu.memory_space<vmem>>, vector<8x8xf32>
    %cst_96 = arith.constant dense<0.000000e+00> : vector<8x256xf32>
    %322 = tpu.matmul %321, %216, %cst_96 {dimension_numbers = #tpu.dot_dimension_numbers<[1], [0], [0], [1], [0, 0, 1, 1], [], []>} : vector<8x8xf32>, vector<8x256xf32>, vector<8x256xf32> -> vector<8x256xf32>
    %323 = arith.addf %320, %322 : vector<8x256xf32>
    %c0_97 = arith.constant 0 : index
    %c0_98 = arith.constant 0 : index
    %c0_99 = arith.constant 0 : index
    %324 = vector.load %arg24[%c0_97, %c0_98, %c0_99] : memref<1x8x256xf32, #tpu.memory_space<vmem>>, vector<1x8x256xf32>
    %325 = vector.shape_cast %324 : vector<1x8x256xf32> to vector<8x256xf32>
    %326 = vector.shape_cast %323 : vector<8x256xf32> to vector<1x8x256xf32>
    tpu.vector_store %arg24[%c0_97, %c0_98, %c0_99], %326 {strides = array<i32>} : memref<1x8x256xf32, #tpu.memory_space<vmem>>, vector<1x8x256xf32>,
    return
  }
  func.func @transform_0(%arg0: i32) -> (i32, i32, i32) {
    %c0_i32 = arith.constant 0 : i32
    %c0_i32_0 = arith.constant 0 : i32
    %c0_i32_1 = arith.constant 0 : i32
    return %arg0, %c0_i32, %c0_i32_0 : i32, i32, i32
  }
  func.func @transform_1(%arg0: i32) -> (i32, i32) {
    %c0_i32 = arith.constant 0 : i32
    %c0_i32_0 = arith.constant 0 : i32
    %c0_i32_1 = arith.constant 0 : i32
    return %c0_i32, %c0_i32_0 : i32, i32
  }
  func.func @transform_2(%arg0: i32) -> (i32, i32) {
    %c0_i32 = arith.constant 0 : i32
    %c0_i32_0 = arith.constant 0 : i32
    %c0_i32_1 = arith.constant 0 : i32
    return %c0_i32, %c0_i32_0 : i32, i32
  }
  func.func @transform_3(%arg0: i32) -> (i32, i32) {
    %c0_i32 = arith.constant 0 : i32
    %c0_i32_0 = arith.constant 0 : i32
    %c0_i32_1 = arith.constant 0 : i32
    return %c0_i32, %c0_i32_0 : i32, i32
  }
  func.func @transform_4(%arg0: i32) -> (i32, i32) {
    %c0_i32 = arith.constant 0 : i32
    %c0_i32_0 = arith.constant 0 : i32
    %c0_i32_1 = arith.constant 0 : i32
    return %c0_i32, %c0_i32_0 : i32, i32
  }
  func.func @transform_5(%arg0: i32) -> (i32, i32) {
    %c0_i32 = arith.constant 0 : i32
    %c0_i32_0 = arith.constant 0 : i32
    %c0_i32_1 = arith.constant 0 : i32
    return %c0_i32, %c0_i32_0 : i32, i32
  }
  func.func @transform_6(%arg0: i32) -> (i32, i32) {
    %c0_i32 = arith.constant 0 : i32
    %c0_i32_0 = arith.constant 0 : i32
    %c0_i32_1 = arith.constant 0 : i32
    return %c0_i32, %c0_i32_0 : i32, i32
  }
  func.func @transform_7(%arg0: i32) -> (i32, i32) {
    %c0_i32 = arith.constant 0 : i32
    %c0_i32_0 = arith.constant 0 : i32
    %c0_i32_1 = arith.constant 0 : i32
    return %c0_i32, %c0_i32_0 : i32, i32
  }
  func.func @transform_8(%arg0: i32) -> (i32, i32) {
    %c0_i32 = arith.constant 0 : i32
    %c0_i32_0 = arith.constant 0 : i32
    %c0_i32_1 = arith.constant 0 : i32
    return %c0_i32, %c0_i32_0 : i32, i32
  }
  func.func @transform_9(%arg0: i32) -> (i32, i32) {
    %c0_i32 = arith.constant 0 : i32
    %c0_i32_0 = arith.constant 0 : i32
    %c0_i32_1 = arith.constant 0 : i32
    return %c0_i32, %c0_i32_0 : i32, i32
  }
  func.func @transform_10(%arg0: i32) -> (i32, i32) {
    %c0_i32 = arith.constant 0 : i32
    %c0_i32_0 = arith.constant 0 : i32
    %c0_i32_1 = arith.constant 0 : i32
    return %c0_i32, %c0_i32_0 : i32, i32
  }
  func.func @transform_11(%arg0: i32) -> (i32, i32) {
    %c0_i32 = arith.constant 0 : i32
    %c0_i32_0 = arith.constant 0 : i32
    %c0_i32_1 = arith.constant 0 : i32
    return %c0_i32, %c0_i32_0 : i32, i32
  }
  func.func @transform_12(%arg0: i32) -> (i32, i32) {
    %c0_i32 = arith.constant 0 : i32
    %c0_i32_0 = arith.constant 0 : i32
    %c0_i32_1 = arith.constant 0 : i32
    return %c0_i32, %c0_i32_0 : i32, i32
  }
  func.func @transform_13(%arg0: i32) -> (i32, i32) {
    %c0_i32 = arith.constant 0 : i32
    %c0_i32_0 = arith.constant 0 : i32
    %c0_i32_1 = arith.constant 0 : i32
    return %c0_i32, %c0_i32_0 : i32, i32
  }
  func.func @transform_14(%arg0: i32) -> (i32, i32) {
    %c0_i32 = arith.constant 0 : i32
    %c0_i32_0 = arith.constant 0 : i32
    %c0_i32_1 = arith.constant 0 : i32
    return %c0_i32, %c0_i32_0 : i32, i32
  }
  func.func @transform_15(%arg0: i32) -> (i32, i32) {
    %c0_i32 = arith.constant 0 : i32
    %c0_i32_0 = arith.constant 0 : i32
    %c0_i32_1 = arith.constant 0 : i32
    return %c0_i32, %c0_i32_0 : i32, i32
  }
  func.func @transform_16(%arg0: i32) -> (i32, i32) {
    %c0_i32 = arith.constant 0 : i32
    %c0_i32_0 = arith.constant 0 : i32
    %c0_i32_1 = arith.constant 0 : i32
    return %c0_i32, %c0_i32_0 : i32, i32
  }
  func.func @transform_17(%arg0: i32) -> (i32, i32) {
    %c0_i32 = arith.constant 0 : i32
    %c0_i32_0 = arith.constant 0 : i32
    %c0_i32_1 = arith.constant 0 : i32
    return %c0_i32, %c0_i32_0 : i32, i32
  }
  func.func @transform_18(%arg0: i32) -> (i32, i32) {
    %c0_i32 = arith.constant 0 : i32
    %c0_i32_0 = arith.constant 0 : i32
    %c0_i32_1 = arith.constant 0 : i32
    return %c0_i32, %c0_i32_0 : i32, i32
  }
  func.func @transform_19(%arg0: i32) -> (i32, i32) {
    %c0_i32 = arith.constant 0 : i32
    %c0_i32_0 = arith.constant 0 : i32
    %c0_i32_1 = arith.constant 0 : i32
    return %c0_i32, %c0_i32_0 : i32, i32
  }
  func.func @transform_20(%arg0: i32) -> (i32, i32) {
    %c0_i32 = arith.constant 0 : i32
    %c0_i32_0 = arith.constant 0 : i32
    %c0_i32_1 = arith.constant 0 : i32
    return %c0_i32, %c0_i32_0 : i32, i32
  }
  func.func @transform_21(%arg0: i32) -> (i32, i32) {
    %c0_i32 = arith.constant 0 : i32
    %c0_i32_0 = arith.constant 0 : i32
    %c0_i32_1 = arith.constant 0 : i32
    return %c0_i32, %c0_i32_0 : i32, i32
  }
  func.func @transform_22(%arg0: i32) -> (i32, i32) {
    %c0_i32 = arith.constant 0 : i32
    %c0_i32_0 = arith.constant 0 : i32
    %c0_i32_1 = arith.constant 0 : i32
    return %c0_i32, %c0_i32_0 : i32, i32
  }
  func.func @transform_23(%arg0: i32) -> (i32, i32, i32) {
    %c0_i32 = arith.constant 0 : i32
    %c0_i32_0 = arith.constant 0 : i32
    %c0_i32_1 = arith.constant 0 : i32
    return %arg0, %c0_i32, %c0_i32_0 : i32, i32, i32
  }
}

</mosaic_0001>

<bundles_post_ra>
// kernel: shufflev2_reduce_block.1
= control target key start
LH: loop header
LB: loop body
LE: loop exit
PB: predicated region body
PF: predicated region fallthrough
CT: control target
= control target key end

     0   :  { %s2902_s0 = inlined_call_operand.vmem [shape: f32[2,16,256], index: 0, kind: input, shape index: {}]   ;;  %s2903_s1 = inlined_call_operand.vmem [shape: f32[9,256], index: 1, kind: input, shape index: {}]   ;;  %s2904_s2 = inlined_call_operand.vmem [shape: f32[4,16], index: 2, kind: input, shape index: {}]   ;;  %s2905_s3 = inlined_call_operand.vmem [shape: f32[4,1], index: 3, kind: input, shape index: {}]   ;;  %s2906_s4 = inlined_call_operand.vmem [shape: f32[4,9], index: 4, kind: input, shape index: {}]   ;;  %s2907_s5 = inlined_call_operand.vmem [shape: f32[4,1], index: 5, kind: input, shape index: {}]   ;;  %s2908_s6 = inlined_call_operand.vmem [shape: f32[8,4], index: 6, kind: input, shape index: {}]   ;;  %s2909_s7 = inlined_call_operand.vmem [shape: f32[8,1], index: 7, kind: input, shape index: {}]   ;;  %s2910_s8 = inlined_call_operand.vmem [shape: f32[8,16], index: 8, kind: input, shape index: {}]   ;;  %s2911_s9 = inlined_call_operand.vmem [shape: f32[4,8], index: 9, kind: input, shape index: {}]   ;;  %s2912_s10 = inlined_call_operand.vmem [shape: f32[4,1], index: 10, kind: input, shape index: {}]   ;;  %s2913_s11 = inlined_call_operand.vmem [shape: f32[4,9], index: 11, kind: input, shape index: {}]   ;;  %s2914_s12 = inlined_call_operand.vmem [shape: f32[4,1], index: 12, kind: input, shape index: {}]   ;;  %s2915_s13 = inlined_call_operand.vmem [shape: f32[8,4], index: 13, kind: input, shape index: {}]   ;;  %s2916_s14 = inlined_call_operand.vmem [shape: f32[8,1], index: 14, kind: input, shape index: {}]   ;;  %s2917_s15 = inlined_call_operand.vmem [shape: f32[8,8], index: 15, kind: input, shape index: {}]   ;;  %s2918_s16 = inlined_call_operand.vmem [shape: f32[4,8], index: 16, kind: input, shape index: {}]   ;;  %s2919_s17 = inlined_call_operand.vmem [shape: f32[4,1], index: 17, kind: input, shape index: {}]   ;;  %s2920_s18 = inlined_call_operand.vmem [shape: f32[4,9], index: 18, kind: input, shape index: {}]   ;;  %s2921_s19 = inlined_call_operand.vmem [shape: f32[4,1], index: 19, kind: input, shape index: {}]   ;;  %s2922_s20 = inlined_call_operand.vmem [shape: f32[8,4], index: 20, kind: input, shape index: {}]   ;;  %s2923_s21 = inlined_call_operand.vmem [shape: f32[8,1], index: 21, kind: input, shape index: {}]   ;;  %s2924_s22 = inlined_call_operand.vmem [shape: f32[8,8], index: 22, kind: input, shape index: {}]   ;;  %s2925_s23 = inlined_call_operand.vmem [shape: f32[2,8,256], index: 23, kind: output, shape index: {}]  }
   0x1   :  { %2933 = sst [smem:[#allocation2_spill]] %s2902_s0 }
   0x2   :  { %2934 = sst [smem:[#allocation3_spill]] %s2903_s1 }
   0x3   :  { %2935 = sst [smem:[#allocation4_spill]] %s2904_s2 }
   0x4   :  { %2936 = sst [smem:[#allocation5_spill]] %s2905_s3 }
   0x5   :  { %2937 = sst [smem:[#allocation6_spill]] %s2906_s4  ;;  %s2342_s4 = smov 0  }
   0x6   :  { %2938 = sst [smem:[#allocation7_spill]] %s2907_s5 }
   0x7   :  { %2939 = sst [smem:[#allocation8_spill]] %s2908_s6 }
   0x8   :  { %2940 = sst [smem:[#allocation9_spill]] %s2909_s7 }
   0x9 LB: > { %s2101_s30 = sadd.s32 4294967295, %s2202_s4   ;;  %p2105_p0 = scmp.ge.s32.totalorder %s2202_s4, 1  ;;  %s2202_s4 = sphi %s2342_s4, %s33_s4  }
   0xa   : > { %p637_p1 = scmp.lt.s32.totalorder %s2202_s4, 3 }
   0xc   : > { %p638_p2 = pnand %p2105_p0, %p637_p1 }
   0xd   : > { %p701_p3 = scmp.lt.s32.totalorder (!%p638_p2), %s2101_s30, 1  ;;  %v2204_v0 = vmov (!%p638_p2), 0.0   ;;  %v2205_v1 = vmov (!%p638_p2), 0   ;;  %s2941_s5 = sld [smem:[#allocation5_spill]] (!%p638_p2)  ;;  %v2206_v4 = vmov (!%p638_p2), 1   ;;  %v2207_v8 = vmov (!%p638_p2), 3  }
   0xe   : > { %641 = sbr.rel (%p638_p2) target bundleno = 1895 (0x767), region = 112  ;;  %794 = vmatprep.mubr.f32.mxu0 (!%p638_p2), %v2204_v0  ;;  %2165 = vset.pattern.permute.xlu0 (!%p638_p2), %v2205_v1  ;;  %s2942_s2 = sld [smem:[#allocation6_spill]] (!%p638_p2)  ;;  %v2208_v12 = vmov (!%p638_p2), 2   ;;  %vm726_vm0 = vcmask (!%p638_p2), 130048   ;;  %v2209_v14 = vmov (!%p638_p2), 4   ;;  %v2210_v15 = vmov (!%p638_p2), 6  }
   0xf   : > { %1123 = vmatprep.mubr.f32.mxu1 (!%p638_p2), %v2204_v0  ;;  %2166 = vset.pattern.permute.xlu1 (!%p638_p2), %v2206_v4  ;;  %s2943_s28 = sld [smem:[#allocation2_spill]] (!%p638_p2)  ;;  %s2944_s24 = sld [smem:[#allocation4_spill]] (!%p638_p2)  ;;  %v2211_v16 = vmov (!%p638_p2), 5   ;;  %v2212_v17 = vmov (!%p638_p2), 7   ;;  %v2213_v18 = vmov (!%p638_p2), 8   ;;  %v816_v47 = vlaneseq (!%p638_p2) }
  0x10   : > { %s2214_s25 = smov (!%p638_p2), 15   ;;  %s2929_s1 = smov (!%p638_p2), 1   ;;  %v1218_v36 = vld [vmem:[%s2912_s10] sm:$0xf] (!%p638_p2)  ;;  %vm1052_vm9 = vcmask (!%p638_p2), 1043456   ;;  %vm1048_vm10 = vcmask (!%p638_p2), 31744  }
  0x11   : > { %s2217_s26 = smov (!%p638_p2), 16   ;;  %s2927_s27 = smov (!%p638_p2), 112   ;;  %v2453_v50 = vshrl.u32 (!%p638_p2), %v816_v47, 7  ;;  %v2467_v58 = vand.u32 (!%p638_p2), 127, %v816_v47  ;;  %vm1224_vm11 = vcmask (!%p638_p2), 64512  }
  0x12   : > { %s2221_s7 = smov (!%p638_p2), 111   ;;  %s2945_s3 = sld [smem:[#allocation7_spill]] (!%p638_p2) }
  0x13   : > { %v720_v2 = vld [vmem:[%s2941_s5] sm:$0xf] (!%p638_p2)  ;;  %s2215_s5 = smov (!%p638_p2), 17   ;;  %v917_v52 = vsub.s32 (!%p638_p2), 4, %v2453_v50  ;;  %v849_v56 = vsub.s32 (!%p638_p2), 1, %v2453_v50  ;;  %v823_v60 = vsub.s32 (!%p638_p2), 0, %v2453_v50 }
  0x14   : > { %723 = vperm.xlu0 (!%p638_p2), %2165, %v720_v2   ;;  %v811_v3 = vld [vmem:[%s2942_s2] sm:$0xf] (!%p638_p2)  ;;  %s2931_s2 = smov (!%p638_p2), 127   ;;  %vm818_vm1 = vcmp.lt.s32.totalorder (!%p638_p2), %v2467_v58, 17  ;;  %vm844_vm2 = vcmp.lt.s32.totalorder (!%p638_p2), %v2467_v58, 16  ;;  %vm937_vm3 = vcmp.lt.s32.totalorder (!%p638_p2), %v2467_v58, 127 }
  0x15   : > { %s2953_s30 = smov (!%p701_p3, %s2101_s30), 1  ;;  %858 = vperm.xlu1 %2166, %v811_v3   ;;  %v719_v13 = vld [vmem:[%s2944_s24] sm:$0xf]  ;;  %vm869_vm4 = vcmp.lt.s32.totalorder %v2467_v58, 15  ;;  %vm894_vm5 = vcmp.lt.s32.totalorder %v2467_v58, 1  ;;  %vm962_vm6 = vcmp.lt.s32.totalorder %v2467_v58, 113 }
  0x16   : > { %s2129_s6 = sshll.u32 %s2953_s30, 5  ;;  %vm987_vm7 = vcmp.lt.s32.totalorder %v2467_v58, 112  ;;  %vm1012_vm8 = vcmp.lt.s32.totalorder %v2467_v58, 111  ;;  %s2949_s24 = smov 112   ;;  %v1870_v58 = vld [vmem:[%s2922_s20] sm:$0xff] }
  0x17   : > { %s705_s29 = scalar_lea.vmem %s2943_s28, %s2129_s6  ;;  %s2219_s6 = smov 113  }
  0x18   : > { %v712_v5 = vld [vmem:[%s705_s29 + $0x8] sm:$0xff]  ;;  %v714_v6 = vld [vmem:[%s705_s29 + $0x18] sm:$0xff]  ;;  %v711_v7 = vld [vmem:[%s705_s29] sm:$0xff]  ;;  %2168 = vset.pattern.permute.xlu0 %v2207_v8  ;;  %s2946_s28 = sld [smem:[#allocation9_spill]] }
  0x19   : > { %v2367_v9 = vpack.c.bf16 %v714_v6, %v712_v5  ;;  %v713_v10 = vld [vmem:[%s705_s29 + $0x10] sm:$0xff]  ;;  %908 = vperm.xlu0 %2168, %v811_v3   ;;  %2167 = vset.pattern.permute.xlu1 %v2208_v12  ;;  %v1033_v34 = vld [vmem:[%s2945_s3] sm:$0xf]  ;;  %s2948_s29 = sld [smem:[#allocation8_spill]] }
  0x1a   : > { %v2369_v11 = vpack.c.bf16 %v713_v10, %v711_v7  ;;  %883 = vperm.xlu1 %2167, %v811_v3   ;;  %v942_v7 = vsub.s32 5, %v2453_v50 }
  0x1b   : > { %2132 = vmatprep.subr.bf16.mxu0 %v2367_v9 }
  0x1c   : > { %2134 = vmatpush1.bf16.msra.mxu0 %v2369_v11 }
  0x1d   : > { %2169 = vset.pattern.permute.xlu0 %v2209_v14 }
  0x1e   : > { %926 = vperm.xlu0 %2169, %v811_v3   ;;  %2171 = vset.pattern.permute.xlu1 %v2210_v15  ;;  %v1042_v35 = vld [vmem:[%s2946_s28] sm:$0xff]  ;;  %s2947_s28 = sld [smem:[#allocation3_spill]] }
  0x1f   : > { %2110 = vmatmul.mubr.msk.f32.vlgmr.msra.gmra.mrb[0].mxu0 %vm726_vm0, %v719_v13  ;;  %976 = vperm.xlu1 %2171, %v811_v3  }
  0x20   : > { %1292 = vmatprep.mubr.f32.mxu0 %v2204_v0 }
  0x22   : > { %2170 = vset.pattern.permute.xlu0 %v2211_v16 }
  0x23   : > { %951 = vperm.xlu0 %2170, %v811_v3   ;;  %2172 = vset.pattern.permute.xlu1 %v2212_v17 }
  0x24   : > { %1001 = vperm.xlu1 %2172, %v811_v3   ;;  %v2459_v53 = vld [vmem:[%s2947_s28] sm:$0xff]  ;;  %v2472_v59 = vld [vmem:[%s2947_s28 + $0x8] sm:$0xff] }
  0x25   : > { %v2465_v57 = vrot.slane %v2459_v53, %v917_v52  ;;  %v2480_v63 = vrot.slane %v2459_v53, %v849_v56  ;;  %v2483_v2 = vrot.slane %v2472_v59, %v849_v56  ;;  %v2487_v5 = vrot.slane %v2472_v59, %v917_v52 }
  0x26   : > { %v2494_v10 = vrot.slane %v2459_v53, %v823_v60  ;;  %v2497_v13 = vrot.slane %v2472_v59, %v823_v60 }
  0x27   : > { %2173 = vset.pattern.permute.xlu0 %v2213_v18 }
  0x28   : > { %1026 = vperm.xlu0 %2173, %v811_v3   ;;  %2175 = vset.pattern.permute.xlu1 %v2205_v1 }
  0x2c   : > { %2174 = vset.pattern.permute.xlu0 %v2205_v1 }
  0x2d   : > { %833 = vperm.xlu0 %2174, %v811_v3   ;;  %v874_v3 = vsub.s32 2, %v2453_v50 }
  0x93   : > { %v724_v19 = vpop.permute.xlu0 %723 }
  0x94   : > { %v2433_v37 = vpop.permute.xlu1 %858 }
  0x98   : > { %v2435_v38 = vpop.permute.xlu0 %908 }
  0x99   : > { %v2437_v39 = vpop.permute.xlu1 %883 }
  0x9d   : > { %v2439_v40 = vpop.permute.xlu0 %926 }
  0x9e   : > { %v2443_v42 = vpop.permute.xlu1 %976 }
  0xa2   : > { %v2441_v41 = vpop.permute.xlu0 %951 }
  0xa3   : > { %v2447_v44 = vpop.permute.xlu1 %1001 }
  0xa7   : > { %v2445_v43 = vpop.permute.xlu0 %1026 }
  0xac   : > { %v2449_v45 = vpop.permute.xlu0 %833 }
  0xf2   : > { %v796_v20 = vpop.f32.mrb[0].mxu0 }
  0xf3   : > { %v797_v21 = vadd.f32 %v796_v20, %v724_v19  ;;  %v798_v22 = vpop.f32.mrb[1].mxu0  ;;  %v899_v20 = vsub.s32 3, %v2453_v50 }
  0xf4   : > { %v799_v24 = vadd.f32 %v798_v22, %v724_v19 }
  0xf5   : > { %v801_v23 = vadd.f32 3.0, %v797_v21  ;;  %v2538_v56 = vrot.slane %v2472_v59, %v899_v20 }
  0xf6   : > { %v802_v27 = vadd.f32 3.0, %v799_v24 }
  0xf7   : > { %v803_v25 = vmax.f32 %v801_v23, 0.0 }
  0xf8   : > { %v804_v30 = vmax.f32 %v802_v27, 0.0  ;;  %v2512_v27 = vrot.slane %v2459_v53, %v874_v3 }
  0xf9   : > { %v805_v26 = vmin.f32 %v803_v25, 6.0 }
  0xfa   : > { %v806_v31 = vmin.f32 %v804_v30, 6.0  ;;  %v2520_v30 = vrot.slane %v2459_v53, %v942_v7 }
  0xfb   : > { %v807_v28 = vmul.f32 %v805_v26, %v797_v21 }
  0xfc   : > { %v808_v32 = vmul.f32 %v806_v31, %v799_v24  ;;  %v2523_v31 = vrot.slane %v2472_v59, %v942_v7 }
  0xfd   : > { %v2386_v29 = vmul.f32 0.16666667, %v807_v28  ;;  %v2515_v28 = vrot.slane %v2472_v59, %v874_v3 }
  0xfe   : > { %v2400_v33 = vmul.f32 0.16666667, %v808_v32  ;;  %v967_v32 = vsub.s32 6, %v2453_v50 }
  0xff   : > { %865 = vrot.lane.b32.xlu1 %v2386_v29, %s2214_s25  ;;  %812 = vrot.lane.b32.xlu0 %v2386_v29, %s2215_s5  ;;  %v923_v6 = vmul.f32 %v2465_v57, %v2386_v29 }
 0x103   : > { %890 = vrot.lane.b32.xlu1 %v2386_v29, %s2929_s1  ;;  %840 = vrot.lane.b32.xlu0 %v2386_v29, %s2217_s26 }
 0x107   : > { %933 = vrot.lane.b32.xlu1 %v2386_v29, %s2931_s2  ;;  %958 = vrot.lane.b32.xlu0 %v2386_v29, %s2219_s6 }
 0x10b   : > { %983 = vrot.lane.b32.xlu1 %v2386_v29, %s2927_s27  ;;  %935 = vrot.lane.b32.xlu0 %v2400_v33, %s2931_s2 }
 0x10f   : > { %814 = vrot.lane.b32.xlu1 %v2400_v33, %s2215_s5  ;;  %1008 = vrot.lane.b32.xlu0 %v2386_v29, %s2221_s7  ;;  %v924_v29 = vmul.f32 %v2487_v5, %v2400_v33 }
 0x113   : > { %842 = vrot.lane.b32.xlu1 %v2400_v33, %s2217_s26  ;;  %1036 = vperm.xlu0 %2174, %v1033_v34   ;;  %v929_v34 = vmul.f32 %v2439_v40, %v923_v6 }
 0x117   : > { %867 = vrot.lane.b32.xlu1 %v2400_v33, %s2214_s25  ;;  %2177 = vset.pattern.permute.xlu0 %v2208_v12 }
 0x11b   : > { %892 = vrot.lane.b32.xlu1 %v2400_v33, %s2929_s1 }
 0x11f   : > { %960 = vrot.lane.b32.xlu1 %v2400_v33, %s2219_s6 }
 0x123   : > { %985 = vrot.lane.b32.xlu1 %v2400_v33, %s2927_s27 }
 0x127   : > { %1010 = vrot.lane.b32.xlu1 %v2400_v33, %s2221_s7 }
 0x12b   : > { %1045 = vperm.xlu1 %2175, %v1042_v35  }
 0x12f   : > { %1221 = vperm.xlu1 %2175, %v1218_v36  }
 0x133   : > { %2176 = vset.pattern.permute.xlu1 %v2206_v4 }
 0x171   : > { %v866_v46 = vpop.permute.xlu1 %865  ;;  %v813_v49 = vpop.permute.xlu0 %812 }
 0x175   : > { %v2451_v48 = vpop.permute.xlu1 %890  ;;  %v841_v54 = vpop.permute.xlu0 %840 }
 0x179   : > { %v934_v51 = vpop.permute.xlu1 %933  ;;  %v2476_v62 = vpop.permute.xlu0 %958 }
 0x17d   : > { %v2461_v55 = vpop.permute.xlu1 %983  ;;  %v936_v35 = vpop.permute.xlu0 %935 }
 0x17e   : > { %v938_v7 = vsel %vm937_vm3, %v934_v51, %v936_v35 }
 0x181   : > { %v815_v61 = vpop.permute.xlu1 %814 }
 0x182   : > { %v819_v21 = vsel %vm818_vm1, %v813_v49, %v815_v61  ;;  %v820_v22 = vsel %vm818_vm1, %v815_v61, %v813_v49 }
 0x183   : > { %v829_v36 = vmul.f32 %v2494_v10, %v820_v22  ;;  %v830_v47 = vmul.f32 %v2497_v13, %v819_v21 }
 0x185   : > { %v843_v19 = vpop.permute.xlu1 %842  ;;  %v837_v21 = vmul.f32 %v2449_v45, %v830_v47  ;;  %v930_v47 = vmul.f32 %v2439_v40, %v924_v29 }
 0x186   : > { %v845_v23 = vsel %vm844_vm2, %v841_v54, %v843_v19  ;;  %v846_v24 = vsel %vm844_vm2, %v843_v19, %v841_v54  ;;  %v2535_v54 = vrot.slane %v2459_v53, %v899_v20  ;;  %v2550_v19 = vrot.slane %v2459_v53, %v967_v32 }
 0x187   : > { %v855_v25 = vmul.f32 %v2480_v63, %v846_v24  ;;  %v856_v26 = vmul.f32 %v2483_v2, %v845_v23  ;;  %v836_v20 = vmul.f32 %v2449_v45, %v829_v36 }
 0x189   : > { %v868_v49 = vpop.permute.xlu1 %867  ;;  %v861_v60 = vmul.f32 %v2433_v37, %v855_v25  ;;  %v862_v61 = vmul.f32 %v2433_v37, %v856_v26  ;;  %v2563_v25 = vrot.slane %v2472_v59, %v967_v32  ;;  %v992_v26 = vsub.s32 7, %v2453_v50 }
 0x18a   : > { %v870_v33 = vsel %vm869_vm4, %v866_v46, %v868_v49  ;;  %v871_v52 = vsel %vm869_vm4, %v868_v49, %v866_v46  ;;  %v939_v46 = vsel %vm937_vm3, %v936_v35, %v934_v51  ;;  %v948_v49 = vmul.f32 %v2520_v30, %v938_v7 }
 0x18b   : > { %v880_v3 = vmul.f32 %v2512_v27, %v871_v52  ;;  %v881_v6 = vmul.f32 %v2515_v28, %v870_v33  ;;  %v863_v35 = vadd.f32 %v861_v60, %v836_v20  ;;  %v864_v45 = vadd.f32 %v862_v61, %v837_v21 }
 0x18c   : > { %v949_v33 = vmul.f32 %v2523_v31, %v939_v46  ;;  %v2581_v29 = vrot.slane %v2459_v53, %v992_v26  ;;  %v954_v20 = vmul.f32 %v2441_v41, %v948_v49 }
 0x18d   : > { %v886_v37 = vmul.f32 %v2437_v39, %v880_v3  ;;  %v887_v22 = vmul.f32 %v2437_v39, %v881_v6  ;;  %v893_v23 = vpop.permute.xlu1 %892  ;;  %v2584_v3 = vrot.slane %v2472_v59, %v992_v26 }
 0x18e   : > { %v895_v24 = vsel %vm894_vm5, %v2451_v48, %v893_v23  ;;  %v896_v51 = vsel %vm894_vm5, %v893_v23, %v2451_v48  ;;  %v955_v21 = vmul.f32 %v2441_v41, %v949_v33 }
 0x18f   : > { %v905_v36 = vmul.f32 %v2535_v54, %v896_v51  ;;  %v906_v39 = vmul.f32 %v2538_v56, %v895_v24  ;;  %v888_v48 = vadd.f32 %v886_v37, %v863_v35  ;;  %v889_v52 = vadd.f32 %v887_v22, %v864_v45  ;;  %v1009_v45 = vpop.permute.xlu0 %1008 }
 0x191   : > { %v911_v32 = vmul.f32 %v2435_v38, %v905_v36  ;;  %v912_v50 = vmul.f32 %v2435_v38, %v906_v39  ;;  %v961_v60 = vpop.permute.xlu1 %960 }
 0x192   : > { %v963_v61 = vsel %vm962_vm6, %v2476_v62, %v961_v60  ;;  %v964_v40 = vsel %vm962_vm6, %v961_v60, %v2476_v62 }
 0x193   : > { %v913_v6 = vadd.f32 %v911_v32, %v888_v48  ;;  %v914_v7 = vadd.f32 %v912_v50, %v889_v52  ;;  %v973_v46 = vmul.f32 %v2550_v19, %v963_v61  ;;  %v974_v38 = vmul.f32 %v2563_v25, %v964_v40 }
 0x195   : > { %v931_v37 = vadd.f32 %v929_v34, %v913_v6  ;;  %v932_v62 = vadd.f32 %v930_v47, %v914_v7  ;;  %v986_v22 = vpop.permute.xlu1 %985  ;;  %v979_v53 = vmul.f32 %v2443_v42, %v973_v46  ;;  %v980_v59 = vmul.f32 %v2443_v42, %v974_v38  ;;  %v2604_v34 = vld [vmem:[%s2947_s28 + $0x10] ss:$0 sm:$0xff]  ;;  %v2609_v42 = vld [vmem:[%s2947_s28 + $0x18] ss:$0 sm:$0xff] }
 0x196   : > { %v988_v23 = vsel %vm987_vm7, %v2461_v55, %v986_v22  ;;  %v989_v24 = vsel %vm987_vm7, %v986_v22, %v2461_v55 }
 0x197   : > { %v956_v51 = vadd.f32 %v954_v20, %v931_v37  ;;  %v957_v26 = vadd.f32 %v955_v21, %v932_v62  ;;  %v998_v35 = vmul.f32 %v2581_v29, %v988_v23  ;;  %v999_v41 = vmul.f32 %v2584_v3, %v989_v24  ;;  %v1041_v20 = vld [vmem:[%s2948_s29] sm:$0xff] }
 0x198   : > { %v1309_v21 = vld [vmem:[%s2913_s11] sm:$0xf] }
 0x199   : > { %v981_v36 = vadd.f32 %v979_v53, %v956_v51  ;;  %v982_v39 = vadd.f32 %v980_v59, %v957_v26  ;;  %v1004_v55 = vmul.f32 %v2447_v44, %v998_v35  ;;  %v1005_v47 = vmul.f32 %v2447_v44, %v999_v41  ;;  %v1011_v49 = vpop.permute.xlu1 %1010  ;;  %v1037_v44 = vpop.permute.xlu0 %1036  ;;  %1352 = vperm.xlu0 %2177, %v1309_v21  }
 0x19a   : > { %v1013_v33 = vsel %vm1012_vm8, %v1009_v45, %v1011_v49  ;;  %v1014_v48 = vsel %vm1012_vm8, %v1011_v49, %v1009_v45  ;;  %1336 = vperm.xlu1 %2176, %v1309_v21  }
 0x19b   : > { %v1023_v52 = vmul.f32 %v2604_v34, %v1013_v33  ;;  %v1024_v32 = vmul.f32 %v2609_v42, %v1014_v48  ;;  %v1006_v50 = vadd.f32 %v1004_v55, %v981_v36  ;;  %v1007_v40 = vadd.f32 %v1005_v47, %v982_v39  ;;  %v1217_v33 = vld [vmem:[%s2911_s9] sm:$0xf] }
 0x19d   : > { %v1029_v60 = vmul.f32 %v2445_v43, %v1023_v52  ;;  %v1030_v61 = vmul.f32 %v2445_v43, %v1024_v32  ;;  %v1140_v43 = vld [vmem:[%s2910_s8] sm:$0xff]  ;;  %2178 = vset.pattern.permute.xlu0 %v2207_v8 }
 0x19e   : > { %2181 = vset.pattern.permute.xlu1 %v2210_v15  ;;  %1368 = vperm.xlu0 %2178, %v1309_v21  }
 0x19f   : > { %v1032_v6 = vadd.f32 %v1030_v61, %v1007_v40  ;;  %v1031_v7 = vadd.f32 %v1029_v60, %v1006_v50  ;;  %1410 = vperm.xlu1 %2181, %v1309_v21  }
 0x1a1   : > { %v1040_v46 = vadd.f32 %v1037_v44, %v1032_v6  ;;  %v1039_v38 = vadd.f32 %v1037_v44, %v1031_v7 }
 0x1a2   : > { %2179 = vset.pattern.permute.xlu0 %v2209_v14 }
 0x1a3   : > { %2113 = vmatprep.subr.msk.mxu1 %vm1052_vm9, %v1040_v46  ;;  %2182 = vset.pattern.permute.xlu1 %v2212_v17 }
 0x1a4   : > { %2114 = vmatpush1.msk.msra.mxu1 %vm1052_vm9, %v1039_v38  ;;  %1378 = vperm.xlu0 %2179, %v1309_v21  }
 0x1a5   : > { %2115 = vmatmul.mubr.msk.f32.vlgmr.msra.gmra.mrb[0].mxu1 %vm1048_vm10, %v1041_v20  ;;  %2136 = vmatprep.subr.bf16.mxu1 %v2367_v9 }
 0x1a6   : > { %2138 = vmatpush1.bf16.msra.mxu1 %v2369_v11  ;;  %1208 = vmatprep.mubr.f32.mxu1 %v2204_v0 }
 0x1a7   : > { %1426 = vperm.xlu1 %2182, %v1309_v21  }
 0x1a8   : > { %2180 = vset.pattern.permute.xlu0 %v2211_v16 }
 0x1a9   : > { %2116 = vmatmul.mubr.msk.f32.vlgmr.msra.gmra.mrb[2].mxu1 %vm726_vm0, %v1140_v43  ;;  %1394 = vperm.xlu0 %2180, %v1309_v21  }
 0x1aa   : > { %1537 = vmatprep.mubr.f32.mxu1 %v2204_v0  ;;  %v1046_v9 = vpop.permute.xlu1 %1045 }
 0x1ab   : > { %2185 = vset.pattern.permute.xlu1 %v2205_v1 }
 0x1ad   : > { %2183 = vset.pattern.permute.xlu0 %v2213_v18 }
 0x1ae   : > { %1442 = vperm.xlu0 %2183, %v1309_v21   ;;  %v1222_v48 = vpop.permute.xlu1 %1221 }
 0x1b2   : > { %2184 = vset.pattern.permute.xlu0 %v2205_v1 }
 0x1b3   : > { %1320 = vperm.xlu0 %2184, %v1309_v21  }
 0x278   : > { %v1125_v11 = vpop.f32.mrb[0].mxu1 }
 0x279   : > { %v1126_v37 = vadd.f32 %v1125_v11, %v1046_v9  ;;  %v1127_v62 = vpop.f32.mrb[1].mxu1  ;;  %v1554_v11 = vld [vmem:[%s2917_s15] sm:$0xff] }
 0x27a   : > { %v1128_v22 = vadd.f32 %v1127_v62, %v1046_v9  ;;  %v1449_v9 = vld [vmem:[%s2914_s12] sm:$0xf]  ;;  %v1337_v62 = vpop.permute.xlu1 %1336 }
 0x27b   : > { %v1130_v53 = vadd.f32 3.0, %v1126_v37 }
 0x27c   : > { %v1131_v59 = vadd.f32 3.0, %v1128_v22  ;;  %v1210_v23 = vpop.f32.mrb[2].mxu1 }
 0x27d   : > { %v1132_v24 = vmax.f32 %v1130_v53, 0.0  ;;  %v1212_v51 = vpop.f32.mrb[3].mxu1 }
 0x27e   : > { %v1133_v26 = vmax.f32 %v1131_v59, 0.0  ;;  %v2703_v53 = vpop.permute.xlu1 %1410 }
 0x27f   : > { %v1134_v35 = vmin.f32 %v1132_v24, 6.0 }
 0x280   : > { %v1135_v41 = vmin.f32 %v1133_v26, 6.0 }
 0x281   : > { %v1136_v45 = vmul.f32 %v1134_v35, %v1126_v37  ;;  %v1632_v37 = vld [vmem:[%s2919_s17] sm:$0xf] }
 0x282   : > { %v1137_v36 = vmul.f32 %v1135_v41, %v1128_v22  ;;  %v1353_v22 = vpop.permute.xlu0 %1352 }
 0x283   : > { %v1138_v39 = vmul.f32 0.16666667, %v1136_v45 }
 0x284   : > { %v1139_v55 = vmul.f32 0.16666667, %v1137_v36 }
 0x285   : > { %v1215_v47 = vadd.f32 %v1210_v23, %v1138_v39  ;;  %v2705_v23 = vpop.permute.xlu1 %1426 }
 0x286   : > { %v1216_v49 = vadd.f32 %v1212_v51, %v1139_v55  ;;  %v1369_v59 = vpop.permute.xlu0 %1368 }
 0x288   : > { %1228 = vmatprep.subr.mxu0 %v1216_v49 }
 0x289   : > { %1229 = vmatpush1.msra.mxu0 %v1215_v47 }
 0x28a   : > { %2117 = vmatmul.mubr.msk.f32.vlgmr.msra.gmra.mrb[2].mxu0 %vm1224_vm11, %v1217_v33  ;;  %1558 = vmatprep.subr.mxu0 %v1216_v49  ;;  %v1379_v24 = vpop.permute.xlu0 %1378 }
 0x28b   : > { %1559 = vmatpush1.msra.mxu0 %v1215_v47  ;;  %1622 = vmatprep.mubr.f32.mxu0 %v2204_v0 }
 0x28e   : > { %2121 = vmatmul.mubr.msk.f32.vlgmr.msra.gmra.mrb[4].mxu0 %vm1224_vm11, %v1554_v11  ;;  %v1395_v51 = vpop.permute.xlu0 %1394 }
 0x28f   : > { %1950 = vmatprep.mubr.f32.mxu0 %v2204_v0 }
 0x292   : > { %v2707_v41 = vpop.permute.xlu0 %1442 }
 0x296   : > { %v1321_v36 = vpop.permute.xlu0 %1320 }
 0x35d   : > { %v1294_v52 = vpop.f32.mrb[2].mxu0 }
 0x35e   : > { %v1295_v32 = vadd.f32 %v1294_v52, %v1222_v48  ;;  %v1296_v50 = vpop.f32.mrb[3].mxu0 }
 0x35f   : > { %v1297_v60 = vadd.f32 %v1296_v50, %v1222_v48 }
 0x360   : > { %v1299_v61 = vadd.f32 3.0, %v1295_v32 }
 0x361   : > { %v1300_v40 = vadd.f32 3.0, %v1297_v60 }
 0x362   : > { %v1301_v6 = vmax.f32 %v1299_v61, 0.0 }
 0x363   : > { %v1302_v44 = vmax.f32 %v1300_v40, 0.0 }
 0x364   : > { %v1303_v7 = vmin.f32 %v1301_v6, 6.0 }
 0x365   : > { %v1304_v20 = vmin.f32 %v1302_v44, 6.0 }
 0x366   : > { %v1305_v46 = vmul.f32 %v1303_v7, %v1295_v32 }
 0x367   : > { %v1306_v43 = vmul.f32 %v1304_v20, %v1297_v60 }
 0x368   : > { %v2651_v38 = vmul.f32 0.16666667, %v1305_v46 }
 0x369   : > { %v2661_v21 = vmul.f32 0.16666667, %v1306_v43 }
 0x36a   : > { %1327 = vrot.lane.b32.xlu0 %v2651_v38, %s2217_s26  ;;  %1310 = vrot.lane.b32.xlu1 %v2651_v38, %s2215_s5 }
 0x36e   : > { %1401 = vrot.lane.b32.xlu0 %v2651_v38, %s2219_s6  ;;  %1343 = vrot.lane.b32.xlu1 %v2651_v38, %s2214_s25 }
 0x372   : > { %1387 = vrot.lane.b32.xlu0 %v2661_v21, %s2931_s2  ;;  %1359 = vrot.lane.b32.xlu1 %v2651_v38, %s2929_s1 }
 0x376   : > { %1433 = vrot.lane.b32.xlu0 %v2651_v38, %s2221_s7  ;;  %1385 = vrot.lane.b32.xlu1 %v2651_v38, %s2931_s2  ;;  %s2951_s2 = smov 1  }
 0x37a   : > { %1452 = vperm.xlu0 %2184, %v1449_v9   ;;  %1417 = vrot.lane.b32.xlu1 %v2651_v38, %s2949_s24 }
 0x37e   : > { %1312 = vrot.lane.b32.xlu1 %v2661_v21, %s2215_s5  ;;  %2187 = vset.pattern.permute.xlu0 %v2208_v12  ;;  %v1458_v12 = vld [vmem:[%s2916_s14] sm:$0xff] }
 0x382   : > { %1329 = vrot.lane.b32.xlu1 %v2661_v21, %s2217_s26 }
 0x386   : > { %1345 = vrot.lane.b32.xlu1 %v2661_v21, %s2214_s25 }
 0x38a   : > { %1361 = vrot.lane.b32.xlu1 %v2661_v21, %s2929_s1  ;;  %s2950_s1 = smov 127  }
 0x38e   : > { %1403 = vrot.lane.b32.xlu1 %v2661_v21, %s2219_s6 }
 0x392   : > { %1419 = vrot.lane.b32.xlu1 %v2661_v21, %s2949_s24 }
 0x396   : > { %1435 = vrot.lane.b32.xlu1 %v2661_v21, %s2221_s7 }
 0x39a   : > { %1461 = vperm.xlu1 %2185, %v1458_v12  }
 0x39e   : > { %1635 = vperm.xlu1 %2185, %v1632_v37  }
 0x3a2   : > { %2186 = vset.pattern.permute.xlu1 %v2206_v4 }
 0x3dc   : > { %v1311_v26 = vpop.permute.xlu1 %1310  ;;  %v1328_v47 = vpop.permute.xlu0 %1327 }
 0x3e0   : > { %v1344_v35 = vpop.permute.xlu1 %1343  ;;  %v1402_v4 = vpop.permute.xlu0 %1401 }
 0x3e4   : > { %v1360_v45 = vpop.permute.xlu1 %1359  ;;  %v1388_v20 = vpop.permute.xlu0 %1387 }
 0x3e8   : > { %v1386_v39 = vpop.permute.xlu1 %1385 }
 0x3e9   : > { %v1389_v37 = vsel %vm937_vm3, %v1386_v39, %v1388_v20 }
 0x3ec   : > { %v1418_v55 = vpop.permute.xlu1 %1417 }
 0x3f0   : > { %v1313_v49 = vpop.permute.xlu1 %1312 }
 0x3f1   : > { %v1314_v48 = vsel %vm818_vm1, %v1311_v26, %v1313_v49  ;;  %v1315_v52 = vsel %vm818_vm1, %v1313_v49, %v1311_v26  ;;  %v1390_v26 = vsel %vm937_vm3, %v1388_v20, %v1386_v39 }
 0x3f2   : > { %v1316_v40 = vmul.f32 %v1315_v52, %v2494_v10  ;;  %v1317_v6 = vmul.f32 %v1314_v48, %v2497_v13 }
 0x3f4   : > { %v1330_v33 = vpop.permute.xlu1 %1329  ;;  %v1324_v49 = vmul.f32 %v1321_v36, %v1317_v6 }
 0x3f5   : > { %v1331_v32 = vsel %vm844_vm2, %v1328_v47, %v1330_v33  ;;  %v1332_v50 = vsel %vm844_vm2, %v1330_v33, %v1328_v47  ;;  %v1323_v47 = vmul.f32 %v1321_v36, %v1316_v40  ;;  %v1392_v40 = vmul.f32 %v1390_v26, %v2523_v31 }
 0x3f6   : > { %v1333_v60 = vmul.f32 %v1332_v50, %v2480_v63  ;;  %v1334_v61 = vmul.f32 %v1331_v32, %v2483_v2 }
 0x3f8   : > { %v1346_v7 = vpop.permute.xlu1 %1345  ;;  %v1339_v43 = vmul.f32 %v1337_v62, %v1333_v60  ;;  %v1340_v9 = vmul.f32 %v1337_v62, %v1334_v61  ;;  %v1376_v62 = vmul.f32 %v2661_v21, %v2487_v5 }
 0x3f9   : > { %v1347_v44 = vsel %vm869_vm4, %v1344_v35, %v1346_v7  ;;  %v1348_v46 = vsel %vm869_vm4, %v1346_v7, %v1344_v35  ;;  %v1375_v35 = vmul.f32 %v2651_v38, %v2465_v57 }
 0x3fa   : > { %v1349_v11 = vmul.f32 %v1348_v46, %v2512_v27  ;;  %v1350_v12 = vmul.f32 %v1347_v44, %v2515_v28  ;;  %v1341_v60 = vadd.f32 %v1339_v43, %v1323_v47  ;;  %v1342_v61 = vadd.f32 %v1340_v9, %v1324_v49 }
 0x3fb   : > { %v1381_v46 = vmul.f32 %v1379_v24, %v1375_v35  ;;  %v1382_v20 = vmul.f32 %v1379_v24, %v1376_v62  ;;  %v1398_v47 = vmul.f32 %v1395_v51, %v1392_v40 }
 0x3fc   : > { %v1355_v33 = vmul.f32 %v1353_v22, %v1349_v11  ;;  %v1356_v48 = vmul.f32 %v1353_v22, %v1350_v12  ;;  %v1362_v52 = vpop.permute.xlu1 %1361  ;;  %v1391_v22 = vmul.f32 %v1389_v37, %v2520_v30 }
 0x3fd   : > { %v1363_v32 = vsel %vm894_vm5, %v1360_v45, %v1362_v52  ;;  %v1364_v50 = vsel %vm894_vm5, %v1362_v52, %v1360_v45 }
 0x3fe   : > { %v1365_v39 = vmul.f32 %v1364_v50, %v2535_v54  ;;  %v1366_v36 = vmul.f32 %v1363_v32, %v2538_v56  ;;  %v1357_v38 = vadd.f32 %v1355_v33, %v1341_v60  ;;  %v1358_v6 = vadd.f32 %v1356_v48, %v1342_v61 }
 0x3ff   : > { %v1397_v26 = vmul.f32 %v1395_v51, %v1391_v22  ;;  %v1434_v51 = vpop.permute.xlu0 %1433 }
 0x400   : > { %v1371_v7 = vmul.f32 %v1369_v59, %v1365_v39  ;;  %v1372_v21 = vmul.f32 %v1369_v59, %v1366_v36  ;;  %v1404_v44 = vpop.permute.xlu1 %1403 }
 0x401   : > { %v1405_v45 = vsel %vm962_vm6, %v1402_v4, %v1404_v44  ;;  %v1406_v43 = vsel %vm962_vm6, %v1404_v44, %v1402_v4 }
 0x402   : > { %v1373_v9 = vadd.f32 %v1371_v7, %v1357_v38  ;;  %v1374_v11 = vadd.f32 %v1372_v21, %v1358_v6  ;;  %v1407_v12 = vmul.f32 %v1405_v45, %v2550_v19  ;;  %v1408_v37 = vmul.f32 %v1406_v43, %v2563_v25 }
 0x404   : > { %v1383_v49 = vadd.f32 %v1381_v46, %v1373_v9  ;;  %v1384_v33 = vadd.f32 %v1382_v20, %v1374_v11  ;;  %v1420_v59 = vpop.permute.xlu1 %1419  ;;  %v1413_v48 = vmul.f32 %v2703_v53, %v1407_v12  ;;  %v1414_v24 = vmul.f32 %v2703_v53, %v1408_v37  ;;  %v1457_v9 = vld [vmem:[%s2915_s13] sm:$0xff]  ;;  %v1624_v11 = vpop.f32.mrb[4].mxu0 }
 0x405   : > { %v1421_v52 = vsel %vm987_vm7, %v1418_v55, %v1420_v59  ;;  %v1422_v4 = vsel %vm987_vm7, %v1420_v59, %v1418_v55  ;;  %v1626_v12 = vpop.f32.mrb[5].mxu0 }
 0x406   : > { %v1400_v35 = vadd.f32 %v1398_v47, %v1384_v33  ;;  %v1399_v62 = vadd.f32 %v1397_v26, %v1383_v49  ;;  %v1423_v32 = vmul.f32 %v1421_v52, %v2581_v29  ;;  %v1424_v50 = vmul.f32 %v1422_v4, %v2584_v3 }
 0x408   : > { %v1415_v60 = vadd.f32 %v1413_v48, %v1399_v62  ;;  %v1416_v61 = vadd.f32 %v1414_v24, %v1400_v35  ;;  %v1429_v39 = vmul.f32 %v2705_v23, %v1423_v32  ;;  %v1430_v36 = vmul.f32 %v2705_v23, %v1424_v50  ;;  %v1436_v53 = vpop.permute.xlu1 %1435  ;;  %v1453_v23 = vpop.permute.xlu0 %1452 }
 0x409   : > { %v1437_v22 = vsel %vm1012_vm8, %v1434_v51, %v1436_v53  ;;  %v1438_v55 = vsel %vm1012_vm8, %v1436_v53, %v1434_v51 }
 0x40a   : > { %v1439_v40 = vmul.f32 %v2604_v34, %v1437_v22  ;;  %v1440_v38 = vmul.f32 %v2609_v42, %v1438_v55  ;;  %v1431_v6 = vadd.f32 %v1429_v39, %v1415_v60  ;;  %v1432_v7 = vadd.f32 %v1430_v36, %v1416_v61 }
 0x40c   : > { %v1445_v21 = vmul.f32 %v2707_v41, %v1439_v40  ;;  %v1446_v44 = vmul.f32 %v2707_v41, %v1440_v38  ;;  %v1722_v41 = vld [vmem:[%s2920_s18] sm:$0xf] }
 0x40d   : > { %1765 = vperm.xlu0 %2187, %v1722_v41   ;;  %1749 = vperm.xlu1 %2186, %v1722_v41  }
 0x40e   : > { %v1447_v46 = vadd.f32 %v1445_v21, %v1431_v6  ;;  %v1448_v20 = vadd.f32 %v1446_v44, %v1432_v7  ;;  %v1862_v7 = vld [vmem:[%s2921_s19] sm:$0xf] }
 0x40f   : > { %v1967_v21 = vld [vmem:[%s2924_s22] sm:$0xff] }
 0x410   : > { %v1455_v45 = vadd.f32 %v1453_v23, %v1447_v46  ;;  %v1456_v43 = vadd.f32 %v1453_v23, %v1448_v20  ;;  %v1871_v44 = vld [vmem:[%s2923_s21] sm:$0xff] }
 0x411   : > { %2188 = vset.pattern.permute.xlu0 %v2207_v8  ;;  %2191 = vset.pattern.permute.xlu1 %v2210_v15 }
 0x412   : > { %2118 = vmatprep.subr.msk.mxu1 %vm1052_vm9, %v1456_v43  ;;  %1781 = vperm.xlu0 %2188, %v1722_v41  }
 0x413   : > { %2119 = vmatpush1.msk.msra.mxu1 %vm1052_vm9, %v1455_v45  ;;  %1823 = vperm.xlu1 %2191, %v1722_v41  }
 0x414   : > { %2120 = vmatmul.mubr.msk.f32.vlgmr.msra.gmra.mrb[4].mxu1 %vm1048_vm10, %v1457_v9 }
 0x415   : > { %1705 = vmatprep.mubr.f32.mxu1 %v2204_v0 }
 0x416   : > { %2189 = vset.pattern.permute.xlu0 %v2209_v14 }
 0x417   : > { %2192 = vset.pattern.permute.xlu1 %v2212_v17  ;;  %1791 = vperm.xlu0 %2189, %v1722_v41  }
 0x418   : > { %1839 = vperm.xlu1 %2192, %v1722_v41  }
 0x419   : > { %v1462_v8 = vpop.permute.xlu1 %1461 }
 0x41b   : > { %2190 = vset.pattern.permute.xlu0 %v2211_v16 }
 0x41c   : > { %2195 = vset.pattern.permute.xlu1 %v2205_v1  ;;  %1807 = vperm.xlu0 %2190, %v1722_v41  }
 0x41d   : > { %v1636_v62 = vpop.permute.xlu1 %1635 }
 0x420   : > { %2193 = vset.pattern.permute.xlu0 %v2213_v18 }
 0x421   : > { %1855 = vperm.xlu0 %2193, %v1722_v41  }
 0x425   : > { %2194 = vset.pattern.permute.xlu0 %v2205_v1  ;;  %v1631_v1 = vld [vmem:[%s2918_s16] sm:$0xf] }
 0x426   : > { %1733 = vperm.xlu0 %2194, %v1722_v41  }
 0x48c   : > { %v1750_v46 = vpop.permute.xlu1 %1749  ;;  %v1766_v20 = vpop.permute.xlu0 %1765 }
 0x491   : > { %v1782_v45 = vpop.permute.xlu0 %1781 }
 0x492   : > { %v2826_v23 = vpop.permute.xlu1 %1823 }
 0x496   : > { %v1792_v9 = vpop.permute.xlu0 %1791 }
 0x497   : > { %v2828_v43 = vpop.permute.xlu1 %1839 }
 0x4e7   : > { %v1539_v15 = vpop.f32.mrb[4].mxu1 }
 0x4e8   : > { %v1540_v37 = vadd.f32 %v1539_v15, %v1462_v8  ;;  %v1541_v26 = vpop.f32.mrb[5].mxu1 }
 0x4e9   : > { %v1542_v14 = vadd.f32 %v1541_v26, %v1462_v8 }
 0x4ea   : > { %v1544_v47 = vadd.f32 3.0, %v1540_v37 }
 0x4eb   : > { %v1545_v17 = vadd.f32 3.0, %v1542_v14 }
 0x4ec   : > { %v1546_v49 = vmax.f32 %v1544_v47, 0.0 }
 0x4ed   : > { %v1547_v33 = vmax.f32 %v1545_v17, 0.0 }
 0x4ee   : > { %v1548_v59 = vmin.f32 %v1546_v49, 6.0 }
 0x4ef   : > { %v1549_v16 = vmin.f32 %v1547_v33, 6.0 }
 0x4f0   : > { %v1550_v48 = vmul.f32 %v1548_v59, %v1540_v37 }
 0x4f1   : > { %v1551_v24 = vmul.f32 %v1549_v16, %v1542_v14 }
 0x4f2   : > { %v1552_v52 = vmul.f32 0.16666667, %v1550_v48 }
 0x4f3   : > { %v1553_v4 = vmul.f32 0.16666667, %v1551_v24 }
 0x4f4   : > { %v1629_v18 = vadd.f32 %v1624_v11, %v1552_v52  ;;  %v1808_v11 = vpop.permute.xlu0 %1807 }
 0x4f5   : > { %v1630_v35 = vadd.f32 %v1626_v12, %v1553_v4 }
 0x4f7   : > { %1641 = vmatprep.subr.mxu1 %v1630_v35 }
 0x4f8   : > { %1642 = vmatpush1.msra.mxu1 %v1629_v18  ;;  %v2830_v8 = vpop.permute.xlu0 %1855 }
 0x4f9   : > { %2122 = vmatmul.mubr.msk.f32.vlgmr.msra.gmra.mrb[6].mxu1 %vm1224_vm11, %v1631_v1  ;;  %1971 = vmatprep.subr.mxu1 %v1630_v35 }
 0x4fa   : > { %1972 = vmatpush1.msra.mxu1 %v1629_v18  ;;  %2035 = vmatprep.mubr.f32.mxu1 %v2204_v0 }
 0x4fc   : > { %v1734_v37 = vpop.permute.xlu0 %1733 }
 0x4fd   : > { %2126 = vmatmul.mubr.msk.f32.vlgmr.msra.gmra.mrb[8].mxu1 %vm1224_vm11, %v1967_v21 }
 0x5cc   : > { %v1707_v32 = vpop.f32.mrb[6].mxu1 }
 0x5cd   : > { %v1708_v50 = vadd.f32 %v1707_v32, %v1636_v62  ;;  %v1709_v51 = vpop.f32.mrb[7].mxu1 }
 0x5ce   : > { %v1710_v60 = vadd.f32 %v1709_v51, %v1636_v62 }
 0x5cf   : > { %v1712_v61 = vadd.f32 3.0, %v1708_v50 }
 0x5d0   : > { %v1713_v39 = vadd.f32 3.0, %v1710_v60 }
 0x5d1   : > { %v1714_v36 = vmax.f32 %v1712_v61, 0.0 }
 0x5d2   : > { %v1715_v22 = vmax.f32 %v1713_v39, 0.0 }
 0x5d3   : > { %v1716_v53 = vmin.f32 %v1714_v36, 6.0 }
 0x5d4   : > { %v1717_v38 = vmin.f32 %v1715_v22, 6.0 }
 0x5d5   : > { %v1718_v55 = vmul.f32 %v1716_v53, %v1708_v50 }
 0x5d6   : > { %v1719_v0 = vmul.f32 %v1717_v38, %v1710_v60 }
 0x5d7   : > { %v2790_v40 = vmul.f32 0.16666667, %v1718_v55 }
 0x5d8   : > { %v1721_v6 = vmul.f32 0.16666667, %v1719_v0 }
 0x5d9   : > { %1740 = vrot.lane.b32.xlu0 %v2790_v40, %s2217_s26  ;;  %1723 = vrot.lane.b32.xlu1 %v2790_v40, %s2215_s5  ;;  %v1788_v55 = vmul.f32 %v2790_v40, %v2465_v57 }
 0x5da   : > { %v1789_v38 = vmul.f32 %v1721_v6, %v2487_v5 }
 0x5dd   : > { %1814 = vrot.lane.b32.xlu0 %v2790_v40, %s2219_s6  ;;  %1756 = vrot.lane.b32.xlu1 %v2790_v40, %s2214_s25 }
 0x5e1   : > { %1800 = vrot.lane.b32.xlu0 %v1721_v6, %s2950_s1  ;;  %1772 = vrot.lane.b32.xlu1 %v2790_v40, %s2951_s2 }
 0x5e5   : > { %1846 = vrot.lane.b32.xlu0 %v2790_v40, %s2221_s7  ;;  %1798 = vrot.lane.b32.xlu1 %v2790_v40, %s2950_s1 }
 0x5e9   : > { %1865 = vperm.xlu0 %2194, %v1862_v7   ;;  %1830 = vrot.lane.b32.xlu1 %v2790_v40, %s2949_s24 }
 0x5ed   : > { %1725 = vrot.lane.b32.xlu1 %v1721_v6, %s2215_s5 }
 0x5f1   : > { %1742 = vrot.lane.b32.xlu1 %v1721_v6, %s2217_s26 }
 0x5f5   : > { %1758 = vrot.lane.b32.xlu1 %v1721_v6, %s2214_s25 }
 0x5f9   : > { %1774 = vrot.lane.b32.xlu1 %v1721_v6, %s2951_s2 }
 0x5fd   : > { %1816 = vrot.lane.b32.xlu1 %v1721_v6, %s2219_s6  ;;  %s2130_s6 = sshll.u32 %s2953_s30, 4 }
 0x5fe   : > { %s710_s2 = scalar_lea.vmem %s2925_s23, %s2130_s6 }
 0x601   : > { %1832 = vrot.lane.b32.xlu1 %v1721_v6, %s2949_s24 }
 0x605   : > { %1848 = vrot.lane.b32.xlu1 %v1721_v6, %s2221_s7 }
 0x609   : > { %1874 = vperm.xlu1 %2195, %v1871_v44  }
 0x64b   : > { %v1724_v12 = vpop.permute.xlu1 %1723  ;;  %v1741_v47 = vpop.permute.xlu0 %1740 }
 0x64f   : > { %v1757_v41 = vpop.permute.xlu1 %1756  ;;  %v1815_v49 = vpop.permute.xlu0 %1814 }
 0x653   : > { %v1773_v15 = vpop.permute.xlu1 %1772  ;;  %v1801_v50 = vpop.permute.xlu0 %1800 }
 0x657   : > { %v1799_v26 = vpop.permute.xlu1 %1798 }
 0x65b   : > { %v1831_v14 = vpop.permute.xlu1 %1830 }
 0x65f   : > { %v1726_v17 = vpop.permute.xlu1 %1725 }
 0x660   : > { %v1727_v59 = vsel %vm818_vm1, %v1724_v12, %v1726_v17  ;;  %v1728_v16 = vsel %vm818_vm1, %v1726_v17, %v1724_v12 }
 0x661   : > { %v1729_v18 = vmul.f32 %v1728_v16, %v2494_v10  ;;  %v1730_v35 = vmul.f32 %v1727_v59, %v2497_v13  ;;  %v1803_v10 = vsel %vm937_vm3, %v1801_v50, %v1799_v26 }
 0x663   : > { %v1743_v33 = vpop.permute.xlu1 %1742  ;;  %v1736_v13 = vmul.f32 %v1734_v37, %v1729_v18  ;;  %v1737_v39 = vmul.f32 %v1734_v37, %v1730_v35  ;;  %v1795_v37 = vmul.f32 %v1792_v9, %v1789_v38 }
 0x664   : > { %v1744_v48 = vsel %vm844_vm2, %v1741_v47, %v1743_v33  ;;  %v1745_v24 = vsel %vm844_vm2, %v1743_v33, %v1741_v47 }
 0x665   : > { %v1746_v52 = vmul.f32 %v1745_v24, %v2480_v63  ;;  %v1747_v4 = vmul.f32 %v1744_v48, %v2483_v2  ;;  %v1802_v2 = vsel %vm937_vm3, %v1799_v26, %v1801_v50 }
 0x667   : > { %v1759_v1 = vpop.permute.xlu1 %1758  ;;  %v1752_v51 = vmul.f32 %v1750_v46, %v1746_v52  ;;  %v1753_v60 = vmul.f32 %v1750_v46, %v1747_v4  ;;  %v1804_v46 = vmul.f32 %v1802_v2, %v2520_v30 }
 0x668   : > { %v1760_v62 = vsel %vm869_vm4, %v1757_v41, %v1759_v1  ;;  %v1761_v32 = vsel %vm869_vm4, %v1759_v1, %v1757_v41  ;;  %v1794_v41 = vmul.f32 %v1792_v9, %v1788_v55 }
 0x669   : > { %v1762_v61 = vmul.f32 %v1761_v32, %v2512_v27  ;;  %v1763_v63 = vmul.f32 %v1760_v62, %v2515_v28  ;;  %v1754_v0 = vadd.f32 %v1752_v51, %v1736_v13  ;;  %v1755_v7 = vadd.f32 %v1753_v60, %v1737_v39 }
 0x66b   : > { %v1768_v36 = vmul.f32 %v1766_v20, %v1762_v61  ;;  %v1769_v53 = vmul.f32 %v1766_v20, %v1763_v63  ;;  %v1775_v22 = vpop.permute.xlu1 %1774  ;;  %v1805_v20 = vmul.f32 %v1803_v10, %v2523_v31  ;;  %v1810_v31 = vmul.f32 %v1808_v11, %v1804_v46 }
 0x66c   : > { %v1776_v27 = vsel %vm894_vm5, %v1773_v15, %v1775_v22  ;;  %v1777_v28 = vsel %vm894_vm5, %v1775_v22, %v1773_v15 }
 0x66d   : > { %v1778_v21 = vmul.f32 %v1777_v28, %v2535_v54  ;;  %v1779_v44 = vmul.f32 %v1776_v27, %v2538_v56  ;;  %v1770_v12 = vadd.f32 %v1768_v36, %v1754_v0  ;;  %v1771_v57 = vadd.f32 %v1769_v53, %v1755_v7 }
 0x66e   : > { %v1811_v17 = vmul.f32 %v1808_v11, %v1805_v20  ;;  %v1847_v11 = vpop.permute.xlu0 %1846 }
 0x66f   : > { %v1784_v40 = vmul.f32 %v1782_v45, %v1778_v21  ;;  %v1785_v5 = vmul.f32 %v1782_v45, %v1779_v44  ;;  %v1817_v6 = vpop.permute.xlu1 %1816 }
 0x670   : > { %v1818_v15 = vsel %vm962_vm6, %v1815_v49, %v1817_v6  ;;  %v1819_v26 = vsel %vm962_vm6, %v1817_v6, %v1815_v49 }
 0x671   : > { %v1786_v54 = vadd.f32 %v1784_v40, %v1770_v12  ;;  %v1787_v47 = vadd.f32 %v1785_v5, %v1771_v57  ;;  %v1820_v56 = vmul.f32 %v1818_v15, %v2550_v19  ;;  %v1821_v30 = vmul.f32 %v1819_v26, %v2563_v25 }
 0x673   : > { %v1796_v33 = vadd.f32 %v1794_v41, %v1786_v54  ;;  %v1797_v59 = vadd.f32 %v1795_v37, %v1787_v47  ;;  %v1833_v45 = vpop.permute.xlu1 %1832  ;;  %v1826_v16 = vmul.f32 %v2826_v23, %v1820_v56  ;;  %v1827_v9 = vmul.f32 %v2826_v23, %v1821_v30 }
 0x674   : > { %v1834_v48 = vsel %vm987_vm7, %v1831_v14, %v1833_v45  ;;  %v1835_v49 = vsel %vm987_vm7, %v1833_v45, %v1831_v14 }
 0x675   : > { %v1813_v24 = vadd.f32 %v1811_v17, %v1797_v59  ;;  %v1812_v52 = vadd.f32 %v1810_v31, %v1796_v33  ;;  %v1836_v19 = vmul.f32 %v1834_v48, %v2581_v29  ;;  %v1837_v25 = vmul.f32 %v1835_v49, %v2584_v3 }
 0x677   : > { %v1828_v4 = vadd.f32 %v1826_v16, %v1812_v52  ;;  %v1829_v18 = vadd.f32 %v1827_v9, %v1813_v24  ;;  %v1842_v35 = vmul.f32 %v2828_v43, %v1836_v19  ;;  %v1843_v1 = vmul.f32 %v2828_v43, %v1837_v25  ;;  %v1849_v23 = vpop.permute.xlu1 %1848  ;;  %v1866_v43 = vpop.permute.xlu0 %1865 }
 0x678   : > { %v1850_v62 = vsel %vm1012_vm8, %v1847_v11, %v1849_v23  ;;  %v1851_v14 = vsel %vm1012_vm8, %v1849_v23, %v1847_v11 }
 0x679   : > { %v1852_v32 = vmul.f32 %v2604_v34, %v1850_v62  ;;  %v1853_v29 = vmul.f32 %v2609_v42, %v1851_v14  ;;  %v1844_v50 = vadd.f32 %v1842_v35, %v1828_v4  ;;  %v1845_v3 = vadd.f32 %v1843_v1, %v1829_v18  ;;  %v2037_v34 = vpop.f32.mrb[8].mxu1 }
 0x67a   : > { %v2039_v42 = vpop.f32.mrb[9].mxu1 }
 0x67b   : > { %v1858_v51 = vmul.f32 %v2830_v8, %v1852_v32  ;;  %v1859_v60 = vmul.f32 %v2830_v8, %v1853_v29 }
 0x67d   : > { %v1860_v61 = vadd.f32 %v1858_v51, %v1844_v50  ;;  %v1861_v63 = vadd.f32 %v1859_v60, %v1845_v3 }
 0x67f   : > { %v1868_v2 = vadd.f32 %v1866_v43, %v1860_v61  ;;  %v1869_v10 = vadd.f32 %v1866_v43, %v1861_v63 }
 0x681   : > { %2123 = vmatprep.subr.msk.mxu0 %vm1052_vm9, %v1869_v10 }
 0x682   : > { %2124 = vmatpush1.msk.msra.mxu0 %vm1052_vm9, %v1868_v2 }
 0x683   : > { %2125 = vmatmul.mubr.msk.f32.vlgmr.msra.gmra.mrb[6].mxu0 %vm1048_vm10, %v1870_v58 }
 0x688   : > { %v1875_v13 = vpop.permute.xlu1 %1874 }
 0x756   : > { %v1952_v8 = vpop.f32.mrb[6].mxu0 }
 0x757   : > { %v1953_v39 = vadd.f32 %v1952_v8, %v1875_v13  ;;  %v1954_v36 = vpop.f32.mrb[7].mxu0 }
 0x758   : > { %v1955_v53 = vadd.f32 %v1954_v36, %v1875_v13 }
 0x759   : > { %v1957_v22 = vadd.f32 3.0, %v1953_v39 }
 0x75a   : > { %v1958_v55 = vadd.f32 3.0, %v1955_v53 }
 0x75b   : > { %v1959_v38 = vmax.f32 %v1957_v22, 0.0 }
 0x75c   : > { %v1960_v27 = vmax.f32 %v1958_v55, 0.0 }
 0x75d   : > { %v1961_v28 = vmin.f32 %v1959_v38, 6.0 }
 0x75e   : > { %v1962_v0 = vmin.f32 %v1960_v27, 6.0 }
 0x75f   : > { %v1963_v7 = vmul.f32 %v1961_v28, %v1953_v39 }
 0x760   : > { %v1964_v21 = vmul.f32 %v1962_v0, %v1955_v53 }
 0x761   : > { %v1965_v44 = vmul.f32 0.16666667, %v1963_v7 }
 0x762   : > { %v1966_v46 = vmul.f32 0.16666667, %v1964_v21 }
 0x763   : > { %v2042_v20 = vadd.f32 %v2037_v34, %v1965_v44 }
 0x764   : > { %v2043_v12 = vadd.f32 %v2039_v42, %v1966_v46 }
 0x765   : > { %2044 = vst [vmem:[%s710_s2] sm:$0xff] %v2042_v20 }
 0x766   : > { %2045 = vst [vmem:[%s710_s2 + $0x8] sm:$0xff] %v2043_v12 }
 0x767 PF: > { %s33_s4 = sadd.s32 1, %s2202_s4  }
 0x768   : > { %p30_p4 = scmp.ge.s32.totalorder %s33_s4, 4  }
 0x76a   :  { %32 = sbr.rel (!%p30_p4) target bundleno = 9 (0x9), region = 142 }

</bundles_post_ra>
